<compile_context>
chip_gen: v5e
topology: v5e:2x2
jax: 0.10.0
libtpu: 0.0.40
codegen_flags: <defaults>
</compile_context>

<pallas_src>
import jax
import jax.numpy as jnp
from jax.experimental import pallas as pl
from jax.experimental.pallas import tpu as pltpu

TIME_STEPS = 24
RECURRENT_MAX = 2.0 ** (1.0 / TIME_STEPS)   # kept for parity with the PyTorch file
RECURRENT_MIN = 0.5 ** (1.0 / TIME_STEPS)


# ---------------------------------------------------------------------------
# Pallas kernel
# ---------------------------------------------------------------------------

def net_kernel(x_ref,
               wx0_ref, u12_0_ref, u3_0_ref, brz0_ref, bu0_ref,
               wx1_ref, u12_1_ref, u3_1_ref, brz1_ref, bu1_ref,
               lw_ref, lb_ref,
               out_ref):
    batch, seq, in_dim = x_ref.shape
    hidden = u3_0_ref.shape[0]

    # ---- hoist all weight loads / bias broadcasts out of the time loop ----
    u12_0 = u12_0_ref[...]                                   # (H, 2H)
    u3_0 = u3_0_ref[...]                                     # (H, H)
    brz0 = jnp.broadcast_to(brz0_ref[...], (batch, 2 * hidden))
    bu0 = jnp.broadcast_to(bu0_ref[...], (batch, hidden))
    wx1 = wx1_ref[...]                                       # (H, 3H)
    u12_1 = u12_1_ref[...]
    u3_1 = u3_1_ref[...]
    brz1 = jnp.broadcast_to(brz1_ref[...], (batch, 2 * hidden))
    bu1 = jnp.broadcast_to(bu1_ref[...], (batch, hidden))

    # ---- layer-0 input projections for ALL timesteps in one wide matmul ----
    # (batch, seq, in) -> (batch*seq, in): lane dim unchanged, sublane merge is a
    # layout no-op for f32 (second-minor dim == 8).
    x2d = x_ref[...].reshape(batch * seq, in_dim)
    xw0_all = jnp.dot(x2d, wx0_ref[...], preferred_element_type=jnp.float32)
    xw0_all = xw0_all.reshape(batch, seq, 3 * hidden)        # (B, T, 3H)

    def cell(xw, h, u12, u3, brz, bu):
        # xw = x @ [W1|W2|W3]  (precomputed), shape (B, 3H)
        hu = jnp.dot(h, u12, preferred_element_type=jnp.float32)      # (B, 2H)
        rz = jax.nn.sigmoid(xw[:, :2 * hidden] + hu + brz)
        r = rz[:, :hidden]
        z = rz[:, hidden:2 * hidden]
        c = jnp.tanh(xw[:, 2 * hidden:]
                     + jnp.dot(r * h, u3, preferred_element_type=jnp.float32)
                     + bu)
        return z * h + (1.0 - z) * c

    # zero initial hidden state (PyTorch myGRU default: hidden=None -> zeros)
    h0 = jnp.zeros((batch, hidden), jnp.float32)
    h1 = jnp.zeros((batch, hidden), jnp.float32)

    # fully unrolled static-length recurrence; hidden state lives in vregs
    for t in range(seq):
        h0 = cell(xw0_all[:, t, :], h0, u12_0, u3_0, brz0, bu0)
        xw1_t = jnp.dot(h0, wx1, preferred_element_type=jnp.float32)   # (B, 3H)
        h1 = cell(xw1_t, h1, u12_1, u3_1, brz1, bu1)

    # final Linear on last timestep of the top layer (.squeeze(1) is a no-op)
    out_ref[...] = (jnp.dot(h1, lw_ref[...], preferred_element_type=jnp.float32)
                    + lb_ref[...])


# ---------------------------------------------------------------------------
# Wrapper: fuse gate parameters, launch single gridless pallas_call
# ---------------------------------------------------------------------------

def _fuse_params(params):
    fused = []
    for li in (0, 1):
        wx = jnp.concatenate(
            [params[f"w1_{li}"], params[f"w2_{li}"], params[f"w3_{li}"]], axis=1)
        u12 = jnp.concatenate([params[f"u1_{li}"], params[f"u2_{li}"]], axis=1)
        brz = jnp.concatenate([params[f"br_{li}"], params[f"bz_{li}"]], axis=1)
        fused += [wx, u12, params[f"u3_{li}"], brz, params[f"bu_{li}"]]
    fused += [params["lw"], params["lb"]]
    return fused


def net_forward(x, params):
    """x: (batch, seq, input_size) float32 -> logits (batch, 18)."""
    batch = x.shape[0]
    n_out = params["lw"].shape[1]

    args = [x] + _fuse_params(params)
    vmem = pl.BlockSpec(memory_space=pltpu.MemorySpace.VMEM)
    return pl.pallas_call(
        net_kernel,
        out_shape=jax.ShapeDtypeStruct((batch, n_out), jnp.float32),
        in_specs=[vmem] * len(args),
        out_specs=vmem,
    )(*args)


# ---------------------------------------------------------------------------
# Deterministic parameter construction (mirrors module shapes / init style)
# ---------------------------------------------------------------------------

def make_params(key, input_size, layer_sizes=(32, 32), n_out=18):
    params = {}
    in_dims = [input_size] + list(layer_sizes[:-1])
    keys = jax.random.split(key, 6 * len(layer_sizes) + 1)
    ki = 0
    for li, (d_in, d_h) in enumerate(zip(in_dims, layer_sizes)):
        for name in ["w1", "w2", "w3"]:
            params[f"{name}_{li}"] = 0.1 * jax.random.normal(keys[ki], (d_in, d_h), jnp.float32)
            ki += 1
        for name in ["u1", "u2", "u3"]:
            params[f"{name}_{li}"] = 0.1 * jax.random.normal(keys[ki], (d_h, d_h), jnp.float32)
            ki += 1
        params[f"br_{li}"] = jnp.ones((1, d_h), jnp.float32)
        params[f"bz_{li}"] = jnp.ones((1, d_h), jnp.float32)
        params[f"bu_{li}"] = jnp.ones((1, d_h), jnp.float32)
    # Linear head: weight ~ N(0, 0.01), bias = 0.1  (stored as (hidden, 18))
    params["lw"] = 0.01 * jax.random.normal(keys[ki], (layer_sizes[-1], n_out), jnp.float32)
    params["lb"] = jnp.full((1, n_out), 0.1, jnp.float32)
    return params


def net_reference(x, params):
    """Pure-JAX reference for correctness checking (unfused math)."""
    batch = x.shape[0]
    h0 = jnp.zeros((batch, params["u1_0"].shape[0]), jnp.float32)
    h1 = jnp.zeros((batch, params["u1_1"].shape[0]), jnp.float32)

    def cell(xt, h, p, li):
        r = jax.nn.sigmoid(xt @ p[f"w1_{li}"] + h @ p[f"u1_{li}"] + p[f"br_{li}"])
        z = jax.nn.sigmoid(xt @ p[f"w2_{li}"] + h @ p[f"u2_{li}"] + p[f"bz_{li}"])
        c = jnp.tanh(xt @ p[f"w3_{li}"] + (r * h) @ p[f"u3_{li}"] + p[f"bu_{li}"])
        return z * h + (1.0 - z) * c

    for t in range(x.shape[1]):
        h0 = cell(x[:, t], h0, params, 0)
        h1 = cell(h0, h1, params, 1)
    return h1 @ params["lw"] + params["lb"]


if __name__ == "__main__":
    batch, seq, input_size = 2, 8, 16
    key = jax.random.PRNGKey(0)
    kx, kp = jax.random.split(key)
    x = jax.random.normal(kx, (batch, seq, input_size), jnp.float32)
    params = make_params(kp, input_size, layer_sizes=(32, 32), n_out=18)

    out = net_forward(x, params)
    out = jax.block_until_ready(out)

    ref = net_reference(x, params)
    assert out.shape == (batch, 18)
    assert jnp.allclose(out, ref, atol=2e-5, rtol=2e-5), "mismatch vs reference"
    print("KERNEL_OK")
</pallas_src>

<mosaic_0001>
module attributes {stable_mosaic.version = 11 : i64} {
  func.func @net_kernel(%arg0: memref<2x8x16xf32, #tpu.memory_space<vmem>>, %arg1: memref<16x96xf32, #tpu.memory_space<vmem>>, %arg2: memref<32x64xf32, #tpu.memory_space<vmem>>, %arg3: memref<32x32xf32, #tpu.memory_space<vmem>>, %arg4: memref<1x64xf32, #tpu.memory_space<vmem>>, %arg5: memref<1x32xf32, #tpu.memory_space<vmem>>, %arg6: memref<32x96xf32, #tpu.memory_space<vmem>>, %arg7: memref<32x64xf32, #tpu.memory_space<vmem>>, %arg8: memref<32x32xf32, #tpu.memory_space<vmem>>, %arg9: memref<1x64xf32, #tpu.memory_space<vmem>>, %arg10: memref<1x32xf32, #tpu.memory_space<vmem>>, %arg11: memref<32x18xf32, #tpu.memory_space<vmem>>, %arg12: memref<1x18xf32, #tpu.memory_space<vmem>>, %arg13: memref<2x18xf32, #tpu.memory_space<vmem>>) attributes {dimension_semantics = [], scalar_prefetch = 0 : i64, scratch_operands = 0 : i64, tpu.core_type = #tpu.core_type<tc>} {
    %c0 = arith.constant 0 : index
    %c0_0 = arith.constant 0 : index
    %0 = vector.load %arg2[%c0, %c0_0] : memref<32x64xf32, #tpu.memory_space<vmem>>, vector<32x64xf32>
    %c0_1 = arith.constant 0 : index
    %c0_2 = arith.constant 0 : index
    %1 = vector.load %arg3[%c0_1, %c0_2] : memref<32x32xf32, #tpu.memory_space<vmem>>, vector<32x32xf32>
    %c0_3 = arith.constant 0 : index
    %c0_4 = arith.constant 0 : index
    %2 = vector.load %arg4[%c0_3, %c0_4] : memref<1x64xf32, #tpu.memory_space<vmem>>, vector<1x64xf32>
    %3 = vector.shape_cast %2 : vector<1x64xf32> to vector<1x64xf32>
    %4 = vector.broadcast %3 : vector<1x64xf32> to vector<2x64xf32>
    %c0_5 = arith.constant 0 : index
    %c0_6 = arith.constant 0 : index
    %5 = vector.load %arg5[%c0_5, %c0_6] : memref<1x32xf32, #tpu.memory_space<vmem>>, vector<1x32xf32>
    %6 = vector.shape_cast %5 : vector<1x32xf32> to vector<1x32xf32>
    %7 = vector.broadcast %6 : vector<1x32xf32> to vector<2x32xf32>
    %c0_7 = arith.constant 0 : index
    %c0_8 = arith.constant 0 : index
    %8 = vector.load %arg6[%c0_7, %c0_8] : memref<32x96xf32, #tpu.memory_space<vmem>>, vector<32x96xf32>
    %c0_9 = arith.constant 0 : index
    %c0_10 = arith.constant 0 : index
    %9 = vector.load %arg7[%c0_9, %c0_10] : memref<32x64xf32, #tpu.memory_space<vmem>>, vector<32x64xf32>
    %c0_11 = arith.constant 0 : index
    %c0_12 = arith.constant 0 : index
    %10 = vector.load %arg8[%c0_11, %c0_12] : memref<32x32xf32, #tpu.memory_space<vmem>>, vector<32x32xf32>
    %c0_13 = arith.constant 0 : index
    %c0_14 = arith.constant 0 : index
    %11 = vector.load %arg9[%c0_13, %c0_14] : memref<1x64xf32, #tpu.memory_space<vmem>>, vector<1x64xf32>
    %12 = vector.shape_cast %11 : vector<1x64xf32> to vector<1x64xf32>
    %13 = vector.broadcast %12 : vector<1x64xf32> to vector<2x64xf32>
    %c0_15 = arith.constant 0 : index
    %c0_16 = arith.constant 0 : index
    %14 = vector.load %arg10[%c0_15, %c0_16] : memref<1x32xf32, #tpu.memory_space<vmem>>, vector<1x32xf32>
    %15 = vector.shape_cast %14 : vector<1x32xf32> to vector<1x32xf32>
    %16 = vector.broadcast %15 : vector<1x32xf32> to vector<2x32xf32>
    %c0_17 = arith.constant 0 : index
    %c0_18 = arith.constant 0 : index
    %c0_19 = arith.constant 0 : index
    %17 = vector.load %arg0[%c0_17, %c0_18, %c0_19] : memref<2x8x16xf32, #tpu.memory_space<vmem>>, vector<2x8x16xf32>
    %18 = vector.shape_cast %17 : vector<2x8x16xf32> to vector<16x16xf32>
    %c0_20 = arith.constant 0 : index
    %c0_21 = arith.constant 0 : index
    %19 = vector.load %arg1[%c0_20, %c0_21] : memref<16x96xf32, #tpu.memory_space<vmem>>, vector<16x96xf32>
    %cst = arith.constant dense<0.000000e+00> : vector<16x96xf32>
    %20 = tpu.matmul %18, %19, %cst {dimension_numbers = #tpu.dot_dimension_numbers<[1], [0], [0], [1], [0, 0, 1, 1], [], []>} : vector<16x16xf32>, vector<16x96xf32>, vector<16x96xf32> -> vector<16x96xf32>
    %21 = vector.shape_cast %20 : vector<16x96xf32> to vector<2x8x96xf32>
    %cst_22 = arith.constant 0.000000e+00 : f32
    %22 = vector.broadcast %cst_22 : f32 to vector<2x32xf32>
    %cst_23 = arith.constant 0.000000e+00 : f32
    %23 = vector.broadcast %cst_23 : f32 to vector<2x32xf32>
    %24 = vector.extract_strided_slice %21 {offsets = [0, 0, 0], sizes = [2, 1, 96], strides = [1, 1, 1]} : vector<2x8x96xf32> to vector<2x1x96xf32>
    %25 = vector.shape_cast %24 : vector<2x1x96xf32> to vector<2x96xf32>
    %cst_24 = arith.constant dense<0.000000e+00> : vector<2x64xf32>
    %26 = tpu.matmul %22, %0, %cst_24 {dimension_numbers = #tpu.dot_dimension_numbers<[1], [0], [0], [1], [0, 0, 1, 1], [], []>} : vector<2x32xf32>, vector<32x64xf32>, vector<2x64xf32> -> vector<2x64xf32>
    %27 = vector.extract_strided_slice %25 {offsets = [0, 0], sizes = [2, 64], strides = [1, 1]} : vector<2x96xf32> to vector<2x64xf32>
    %28 = arith.addf %27, %26 : vector<2x64xf32>
    %29 = arith.addf %28, %4 : vector<2x64xf32>
    %30 = arith.negf %29 : vector<2x64xf32>
    %31 = math.exp %30 : vector<2x64xf32>
    %cst_25 = arith.constant 1.000000e+00 : f32
    %32 = vector.broadcast %cst_25 : f32 to vector<2x64xf32>
    %33 = arith.addf %32, %31 : vector<2x64xf32>
    %34 = arith.divf %32, %33 : vector<2x64xf32>
    %35 = vector.extract_strided_slice %34 {offsets = [0, 0], sizes = [2, 32], strides = [1, 1]} : vector<2x64xf32> to vector<2x32xf32>
    %36 = vector.extract_strided_slice %34 {offsets = [0, 32], sizes = [2, 32], strides = [1, 1]} : vector<2x64xf32> to vector<2x32xf32>
    %37 = vector.extract_strided_slice %25 {offsets = [0, 64], sizes = [2, 32], strides = [1, 1]} : vector<2x96xf32> to vector<2x32xf32>
    %38 = arith.mulf %35, %22 : vector<2x32xf32>
    %cst_26 = arith.constant dense<0.000000e+00> : vector<2x32xf32>
    %39 = tpu.matmul %38, %1, %cst_26 {dimension_numbers = #tpu.dot_dimension_numbers<[1], [0], [0], [1], [0, 0, 1, 1], [], []>} : vector<2x32xf32>, vector<32x32xf32>, vector<2x32xf32> -> vector<2x32xf32>
    %40 = arith.addf %37, %39 : vector<2x32xf32>
    %41 = arith.addf %40, %7 : vector<2x32xf32>
    %42 = math.tanh %41 : vector<2x32xf32>
    %43 = arith.mulf %36, %22 : vector<2x32xf32>
    %cst_27 = arith.constant 1.000000e+00 : f32
    %44 = vector.broadcast %cst_27 : f32 to vector<2x32xf32>
    %45 = arith.subf %44, %36 : vector<2x32xf32>
    %46 = arith.mulf %45, %42 : vector<2x32xf32>
    %47 = arith.addf %43, %46 : vector<2x32xf32>
    %cst_28 = arith.constant dense<0.000000e+00> : vector<2x96xf32>
    %48 = tpu.matmul %47, %8, %cst_28 {dimension_numbers = #tpu.dot_dimension_numbers<[1], [0], [0], [1], [0, 0, 1, 1], [], []>} : vector<2x32xf32>, vector<32x96xf32>, vector<2x96xf32> -> vector<2x96xf32>
    %cst_29 = arith.constant dense<0.000000e+00> : vector<2x64xf32>
    %49 = tpu.matmul %23, %9, %cst_29 {dimension_numbers = #tpu.dot_dimension_numbers<[1], [0], [0], [1], [0, 0, 1, 1], [], []>} : vector<2x32xf32>, vector<32x64xf32>, vector<2x64xf32> -> vector<2x64xf32>
    %50 = vector.extract_strided_slice %48 {offsets = [0, 0], sizes = [2, 64], strides = [1, 1]} : vector<2x96xf32> to vector<2x64xf32>
    %51 = arith.addf %50, %49 : vector<2x64xf32>
    %52 = arith.addf %51, %13 : vector<2x64xf32>
    %53 = arith.negf %52 : vector<2x64xf32>
    %54 = math.exp %53 : vector<2x64xf32>
    %cst_30 = arith.constant 1.000000e+00 : f32
    %55 = vector.broadcast %cst_30 : f32 to vector<2x64xf32>
    %56 = arith.addf %55, %54 : vector<2x64xf32>
    %57 = arith.divf %55, %56 : vector<2x64xf32>
    %58 = vector.extract_strided_slice %57 {offsets = [0, 0], sizes = [2, 32], strides = [1, 1]} : vector<2x64xf32> to vector<2x32xf32>
    %59 = vector.extract_strided_slice %57 {offsets = [0, 32], sizes = [2, 32], strides = [1, 1]} : vector<2x64xf32> to vector<2x32xf32>
    %60 = vector.extract_strided_slice %48 {offsets = [0, 64], sizes = [2, 32], strides = [1, 1]} : vector<2x96xf32> to vector<2x32xf32>
    %61 = arith.mulf %58, %23 : vector<2x32xf32>
    %cst_31 = arith.constant dense<0.000000e+00> : vector<2x32xf32>
    %62 = tpu.matmul %61, %10, %cst_31 {dimension_numbers = #tpu.dot_dimension_numbers<[1], [0], [0], [1], [0, 0, 1, 1], [], []>} : vector<2x32xf32>, vector<32x32xf32>, vector<2x32xf32> -> vector<2x32xf32>
    %63 = arith.addf %60, %62 : vector<2x32xf32>
    %64 = arith.addf %63, %16 : vector<2x32xf32>
    %65 = math.tanh %64 : vector<2x32xf32>
    %66 = arith.mulf %59, %23 : vector<2x32xf32>
    %cst_32 = arith.constant 1.000000e+00 : f32
    %67 = vector.broadcast %cst_32 : f32 to vector<2x32xf32>
    %68 = arith.subf %67, %59 : vector<2x32xf32>
    %69 = arith.mulf %68, %65 : vector<2x32xf32>
    %70 = arith.addf %66, %69 : vector<2x32xf32>
    %71 = vector.extract_strided_slice %21 {offsets = [0, 1, 0], sizes = [2, 1, 96], strides = [1, 1, 1]} : vector<2x8x96xf32> to vector<2x1x96xf32>
    %72 = vector.shape_cast %71 : vector<2x1x96xf32> to vector<2x96xf32>
    %cst_33 = arith.constant dense<0.000000e+00> : vector<2x64xf32>
    %73 = tpu.matmul %47, %0, %cst_33 {dimension_numbers = #tpu.dot_dimension_numbers<[1], [0], [0], [1], [0, 0, 1, 1], [], []>} : vector<2x32xf32>, vector<32x64xf32>, vector<2x64xf32> -> vector<2x64xf32>
    %74 = vector.extract_strided_slice %72 {offsets = [0, 0], sizes = [2, 64], strides = [1, 1]} : vector<2x96xf32> to vector<2x64xf32>
    %75 = arith.addf %74, %73 : vector<2x64xf32>
    %76 = arith.addf %75, %4 : vector<2x64xf32>
    %77 = arith.negf %76 : vector<2x64xf32>
    %78 = math.exp %77 : vector<2x64xf32>
    %cst_34 = arith.constant 1.000000e+00 : f32
    %79 = vector.broadcast %cst_34 : f32 to vector<2x64xf32>
    %80 = arith.addf %79, %78 : vector<2x64xf32>
    %81 = arith.divf %79, %80 : vector<2x64xf32>
    %82 = vector.extract_strided_slice %81 {offsets = [0, 0], sizes = [2, 32], strides = [1, 1]} : vector<2x64xf32> to vector<2x32xf32>
    %83 = vector.extract_strided_slice %81 {offsets = [0, 32], sizes = [2, 32], strides = [1, 1]} : vector<2x64xf32> to vector<2x32xf32>
    %84 = vector.extract_strided_slice %72 {offsets = [0, 64], sizes = [2, 32], strides = [1, 1]} : vector<2x96xf32> to vector<2x32xf32>
    %85 = arith.mulf %82, %47 : vector<2x32xf32>
    %cst_35 = arith.constant dense<0.000000e+00> : vector<2x32xf32>
    %86 = tpu.matmul %85, %1, %cst_35 {dimension_numbers = #tpu.dot_dimension_numbers<[1], [0], [0], [1], [0, 0, 1, 1], [], []>} : vector<2x32xf32>, vector<32x32xf32>, vector<2x32xf32> -> vector<2x32xf32>
    %87 = arith.addf %84, %86 : vector<2x32xf32>
    %88 = arith.addf %87, %7 : vector<2x32xf32>
    %89 = math.tanh %88 : vector<2x32xf32>
    %90 = arith.mulf %83, %47 : vector<2x32xf32>
    %cst_36 = arith.constant 1.000000e+00 : f32
    %91 = vector.broadcast %cst_36 : f32 to vector<2x32xf32>
    %92 = arith.subf %91, %83 : vector<2x32xf32>
    %93 = arith.mulf %92, %89 : vector<2x32xf32>
    %94 = arith.addf %90, %93 : vector<2x32xf32>
    %cst_37 = arith.constant dense<0.000000e+00> : vector<2x96xf32>
    %95 = tpu.matmul %94, %8, %cst_37 {dimension_numbers = #tpu.dot_dimension_numbers<[1], [0], [0], [1], [0, 0, 1, 1], [], []>} : vector<2x32xf32>, vector<32x96xf32>, vector<2x96xf32> -> vector<2x96xf32>
    %cst_38 = arith.constant dense<0.000000e+00> : vector<2x64xf32>
    %96 = tpu.matmul %70, %9, %cst_38 {dimension_numbers = #tpu.dot_dimension_numbers<[1], [0], [0], [1], [0, 0, 1, 1], [], []>} : vector<2x32xf32>, vector<32x64xf32>, vector<2x64xf32> -> vector<2x64xf32>
    %97 = vector.extract_strided_slice %95 {offsets = [0, 0], sizes = [2, 64], strides = [1, 1]} : vector<2x96xf32> to vector<2x64xf32>
    %98 = arith.addf %97, %96 : vector<2x64xf32>
    %99 = arith.addf %98, %13 : vector<2x64xf32>
    %100 = arith.negf %99 : vector<2x64xf32>
    %101 = math.exp %100 : vector<2x64xf32>
    %cst_39 = arith.constant 1.000000e+00 : f32
    %102 = vector.broadcast %cst_39 : f32 to vector<2x64xf32>
    %103 = arith.addf %102, %101 : vector<2x64xf32>
    %104 = arith.divf %102, %103 : vector<2x64xf32>
    %105 = vector.extract_strided_slice %104 {offsets = [0, 0], sizes = [2, 32], strides = [1, 1]} : vector<2x64xf32> to vector<2x32xf32>
    %106 = vector.extract_strided_slice %104 {offsets = [0, 32], sizes = [2, 32], strides = [1, 1]} : vector<2x64xf32> to vector<2x32xf32>
    %107 = vector.extract_strided_slice %95 {offsets = [0, 64], sizes = [2, 32], strides = [1, 1]} : vector<2x96xf32> to vector<2x32xf32>
    %108 = arith.mulf %105, %70 : vector<2x32xf32>
    %cst_40 = arith.constant dense<0.000000e+00> : vector<2x32xf32>
    %109 = tpu.matmul %108, %10, %cst_40 {dimension_numbers = #tpu.dot_dimension_numbers<[1], [0], [0], [1], [0, 0, 1, 1], [], []>} : vector<2x32xf32>, vector<32x32xf32>, vector<2x32xf32> -> vector<2x32xf32>
    %110 = arith.addf %107, %109 : vector<2x32xf32>
    %111 = arith.addf %110, %16 : vector<2x32xf32>
    %112 = math.tanh %111 : vector<2x32xf32>
    %113 = arith.mulf %106, %70 : vector<2x32xf32>
    %cst_41 = arith.constant 1.000000e+00 : f32
    %114 = vector.broadcast %cst_41 : f32 to vector<2x32xf32>
    %115 = arith.subf %114, %106 : vector<2x32xf32>
    %116 = arith.mulf %115, %112 : vector<2x32xf32>
    %117 = arith.addf %113, %116 : vector<2x32xf32>
    %118 = vector.extract_strided_slice %21 {offsets = [0, 2, 0], sizes = [2, 1, 96], strides = [1, 1, 1]} : vector<2x8x96xf32> to vector<2x1x96xf32>
    %119 = vector.shape_cast %118 : vector<2x1x96xf32> to vector<2x96xf32>
    %cst_42 = arith.constant dense<0.000000e+00> : vector<2x64xf32>
    %120 = tpu.matmul %94, %0, %cst_42 {dimension_numbers = #tpu.dot_dimension_numbers<[1], [0], [0], [1], [0, 0, 1, 1], [], []>} : vector<2x32xf32>, vector<32x64xf32>, vector<2x64xf32> -> vector<2x64xf32>
    %121 = vector.extract_strided_slice %119 {offsets = [0, 0], sizes = [2, 64], strides = [1, 1]} : vector<2x96xf32> to vector<2x64xf32>
    %122 = arith.addf %121, %120 : vector<2x64xf32>
    %123 = arith.addf %122, %4 : vector<2x64xf32>
    %124 = arith.negf %123 : vector<2x64xf32>
    %125 = math.exp %124 : vector<2x64xf32>
    %cst_43 = arith.constant 1.000000e+00 : f32
    %126 = vector.broadcast %cst_43 : f32 to vector<2x64xf32>
    %127 = arith.addf %126, %125 : vector<2x64xf32>
    %128 = arith.divf %126, %127 : vector<2x64xf32>
    %129 = vector.extract_strided_slice %128 {offsets = [0, 0], sizes = [2, 32], strides = [1, 1]} : vector<2x64xf32> to vector<2x32xf32>
    %130 = vector.extract_strided_slice %128 {offsets = [0, 32], sizes = [2, 32], strides = [1, 1]} : vector<2x64xf32> to vector<2x32xf32>
    %131 = vector.extract_strided_slice %119 {offsets = [0, 64], sizes = [2, 32], strides = [1, 1]} : vector<2x96xf32> to vector<2x32xf32>
    %132 = arith.mulf %129, %94 : vector<2x32xf32>
    %cst_44 = arith.constant dense<0.000000e+00> : vector<2x32xf32>
    %133 = tpu.matmul %132, %1, %cst_44 {dimension_numbers = #tpu.dot_dimension_numbers<[1], [0], [0], [1], [0, 0, 1, 1], [], []>} : vector<2x32xf32>, vector<32x32xf32>, vector<2x32xf32> -> vector<2x32xf32>
    %134 = arith.addf %131, %133 : vector<2x32xf32>
    %135 = arith.addf %134, %7 : vector<2x32xf32>
    %136 = math.tanh %135 : vector<2x32xf32>
    %137 = arith.mulf %130, %94 : vector<2x32xf32>
    %cst_45 = arith.constant 1.000000e+00 : f32
    %138 = vector.broadcast %cst_45 : f32 to vector<2x32xf32>
    %139 = arith.subf %138, %130 : vector<2x32xf32>
    %140 = arith.mulf %139, %136 : vector<2x32xf32>
    %141 = arith.addf %137, %140 : vector<2x32xf32>
    %cst_46 = arith.constant dense<0.000000e+00> : vector<2x96xf32>
    %142 = tpu.matmul %141, %8, %cst_46 {dimension_numbers = #tpu.dot_dimension_numbers<[1], [0], [0], [1], [0, 0, 1, 1], [], []>} : vector<2x32xf32>, vector<32x96xf32>, vector<2x96xf32> -> vector<2x96xf32>
    %cst_47 = arith.constant dense<0.000000e+00> : vector<2x64xf32>
    %143 = tpu.matmul %117, %9, %cst_47 {dimension_numbers = #tpu.dot_dimension_numbers<[1], [0], [0], [1], [0, 0, 1, 1], [], []>} : vector<2x32xf32>, vector<32x64xf32>, vector<2x64xf32> -> vector<2x64xf32>
    %144 = vector.extract_strided_slice %142 {offsets = [0, 0], sizes = [2, 64], strides = [1, 1]} : vector<2x96xf32> to vector<2x64xf32>
    %145 = arith.addf %144, %143 : vector<2x64xf32>
    %146 = arith.addf %145, %13 : vector<2x64xf32>
    %147 = arith.negf %146 : vector<2x64xf32>
    %148 = math.exp %147 : vector<2x64xf32>
    %cst_48 = arith.constant 1.000000e+00 : f32
    %149 = vector.broadcast %cst_48 : f32 to vector<2x64xf32>
    %150 = arith.addf %149, %148 : vector<2x64xf32>
    %151 = arith.divf %149, %150 : vector<2x64xf32>
    %152 = vector.extract_strided_slice %151 {offsets = [0, 0], sizes = [2, 32], strides = [1, 1]} : vector<2x64xf32> to vector<2x32xf32>
    %153 = vector.extract_strided_slice %151 {offsets = [0, 32], sizes = [2, 32], strides = [1, 1]} : vector<2x64xf32> to vector<2x32xf32>
    %154 = vector.extract_strided_slice %142 {offsets = [0, 64], sizes = [2, 32], strides = [1, 1]} : vector<2x96xf32> to vector<2x32xf32>
    %155 = arith.mulf %152, %117 : vector<2x32xf32>
    %cst_49 = arith.constant dense<0.000000e+00> : vector<2x32xf32>
    %156 = tpu.matmul %155, %10, %cst_49 {dimension_numbers = #tpu.dot_dimension_numbers<[1], [0], [0], [1], [0, 0, 1, 1], [], []>} : vector<2x32xf32>, vector<32x32xf32>, vector<2x32xf32> -> vector<2x32xf32>
    %157 = arith.addf %154, %156 : vector<2x32xf32>
    %158 = arith.addf %157, %16 : vector<2x32xf32>
    %159 = math.tanh %158 : vector<2x32xf32>
    %160 = arith.mulf %153, %117 : vector<2x32xf32>
    %cst_50 = arith.constant 1.000000e+00 : f32
    %161 = vector.broadcast %cst_50 : f32 to vector<2x32xf32>
    %162 = arith.subf %161, %153 : vector<2x32xf32>
    %163 = arith.mulf %162, %159 : vector<2x32xf32>
    %164 = arith.addf %160, %163 : vector<2x32xf32>
    %165 = vector.extract_strided_slice %21 {offsets = [0, 3, 0], sizes = [2, 1, 96], strides = [1, 1, 1]} : vector<2x8x96xf32> to vector<2x1x96xf32>
    %166 = vector.shape_cast %165 : vector<2x1x96xf32> to vector<2x96xf32>
    %cst_51 = arith.constant dense<0.000000e+00> : vector<2x64xf32>
    %167 = tpu.matmul %141, %0, %cst_51 {dimension_numbers = #tpu.dot_dimension_numbers<[1], [0], [0], [1], [0, 0, 1, 1], [], []>} : vector<2x32xf32>, vector<32x64xf32>, vector<2x64xf32> -> vector<2x64xf32>
    %168 = vector.extract_strided_slice %166 {offsets = [0, 0], sizes = [2, 64], strides = [1, 1]} : vector<2x96xf32> to vector<2x64xf32>
    %169 = arith.addf %168, %167 : vector<2x64xf32>
    %170 = arith.addf %169, %4 : vector<2x64xf32>
    %171 = arith.negf %170 : vector<2x64xf32>
    %172 = math.exp %171 : vector<2x64xf32>
    %cst_52 = arith.constant 1.000000e+00 : f32
    %173 = vector.broadcast %cst_52 : f32 to vector<2x64xf32>
    %174 = arith.addf %173, %172 : vector<2x64xf32>
    %175 = arith.divf %173, %174 : vector<2x64xf32>
    %176 = vector.extract_strided_slice %175 {offsets = [0, 0], sizes = [2, 32], strides = [1, 1]} : vector<2x64xf32> to vector<2x32xf32>
    %177 = vector.extract_strided_slice %175 {offsets = [0, 32], sizes = [2, 32], strides = [1, 1]} : vector<2x64xf32> to vector<2x32xf32>
    %178 = vector.extract_strided_slice %166 {offsets = [0, 64], sizes = [2, 32], strides = [1, 1]} : vector<2x96xf32> to vector<2x32xf32>
    %179 = arith.mulf %176, %141 : vector<2x32xf32>
    %cst_53 = arith.constant dense<0.000000e+00> : vector<2x32xf32>
    %180 = tpu.matmul %179, %1, %cst_53 {dimension_numbers = #tpu.dot_dimension_numbers<[1], [0], [0], [1], [0, 0, 1, 1], [], []>} : vector<2x32xf32>, vector<32x32xf32>, vector<2x32xf32> -> vector<2x32xf32>
    %181 = arith.addf %178, %180 : vector<2x32xf32>
    %182 = arith.addf %181, %7 : vector<2x32xf32>
    %183 = math.tanh %182 : vector<2x32xf32>
    %184 = arith.mulf %177, %141 : vector<2x32xf32>
    %cst_54 = arith.constant 1.000000e+00 : f32
    %185 = vector.broadcast %cst_54 : f32 to vector<2x32xf32>
    %186 = arith.subf %185, %177 : vector<2x32xf32>
    %187 = arith.mulf %186, %183 : vector<2x32xf32>
    %188 = arith.addf %184, %187 : vector<2x32xf32>
    %cst_55 = arith.constant dense<0.000000e+00> : vector<2x96xf32>
    %189 = tpu.matmul %188, %8, %cst_55 {dimension_numbers = #tpu.dot_dimension_numbers<[1], [0], [0], [1], [0, 0, 1, 1], [], []>} : vector<2x32xf32>, vector<32x96xf32>, vector<2x96xf32> -> vector<2x96xf32>
    %cst_56 = arith.constant dense<0.000000e+00> : vector<2x64xf32>
    %190 = tpu.matmul %164, %9, %cst_56 {dimension_numbers = #tpu.dot_dimension_numbers<[1], [0], [0], [1], [0, 0, 1, 1], [], []>} : vector<2x32xf32>, vector<32x64xf32>, vector<2x64xf32> -> vector<2x64xf32>
    %191 = vector.extract_strided_slice %189 {offsets = [0, 0], sizes = [2, 64], strides = [1, 1]} : vector<2x96xf32> to vector<2x64xf32>
    %192 = arith.addf %191, %190 : vector<2x64xf32>
    %193 = arith.addf %192, %13 : vector<2x64xf32>
    %194 = arith.negf %193 : vector<2x64xf32>
    %195 = math.exp %194 : vector<2x64xf32>
    %cst_57 = arith.constant 1.000000e+00 : f32
    %196 = vector.broadcast %cst_57 : f32 to vector<2x64xf32>
    %197 = arith.addf %196, %195 : vector<2x64xf32>
    %198 = arith.divf %196, %197 : vector<2x64xf32>
    %199 = vector.extract_strided_slice %198 {offsets = [0, 0], sizes = [2, 32], strides = [1, 1]} : vector<2x64xf32> to vector<2x32xf32>
    %200 = vector.extract_strided_slice %198 {offsets = [0, 32], sizes = [2, 32], strides = [1, 1]} : vector<2x64xf32> to vector<2x32xf32>
    %201 = vector.extract_strided_slice %189 {offsets = [0, 64], sizes = [2, 32], strides = [1, 1]} : vector<2x96xf32> to vector<2x32xf32>
    %202 = arith.mulf %199, %164 : vector<2x32xf32>
    %cst_58 = arith.constant dense<0.000000e+00> : vector<2x32xf32>
    %203 = tpu.matmul %202, %10, %cst_58 {dimension_numbers = #tpu.dot_dimension_numbers<[1], [0], [0], [1], [0, 0, 1, 1], [], []>} : vector<2x32xf32>, vector<32x32xf32>, vector<2x32xf32> -> vector<2x32xf32>
    %204 = arith.addf %201, %203 : vector<2x32xf32>
    %205 = arith.addf %204, %16 : vector<2x32xf32>
    %206 = math.tanh %205 : vector<2x32xf32>
    %207 = arith.mulf %200, %164 : vector<2x32xf32>
    %cst_59 = arith.constant 1.000000e+00 : f32
    %208 = vector.broadcast %cst_59 : f32 to vector<2x32xf32>
    %209 = arith.subf %208, %200 : vector<2x32xf32>
    %210 = arith.mulf %209, %206 : vector<2x32xf32>
    %211 = arith.addf %207, %210 : vector<2x32xf32>
    %212 = vector.extract_strided_slice %21 {offsets = [0, 4, 0], sizes = [2, 1, 96], strides = [1, 1, 1]} : vector<2x8x96xf32> to vector<2x1x96xf32>
    %213 = vector.shape_cast %212 : vector<2x1x96xf32> to vector<2x96xf32>
    %cst_60 = arith.constant dense<0.000000e+00> : vector<2x64xf32>
    %214 = tpu.matmul %188, %0, %cst_60 {dimension_numbers = #tpu.dot_dimension_numbers<[1], [0], [0], [1], [0, 0, 1, 1], [], []>} : vector<2x32xf32>, vector<32x64xf32>, vector<2x64xf32> -> vector<2x64xf32>
    %215 = vector.extract_strided_slice %213 {offsets = [0, 0], sizes = [2, 64], strides = [1, 1]} : vector<2x96xf32> to vector<2x64xf32>
    %216 = arith.addf %215, %214 : vector<2x64xf32>
    %217 = arith.addf %216, %4 : vector<2x64xf32>
    %218 = arith.negf %217 : vector<2x64xf32>
    %219 = math.exp %218 : vector<2x64xf32>
    %cst_61 = arith.constant 1.000000e+00 : f32
    %220 = vector.broadcast %cst_61 : f32 to vector<2x64xf32>
    %221 = arith.addf %220, %219 : vector<2x64xf32>
    %222 = arith.divf %220, %221 : vector<2x64xf32>
    %223 = vector.extract_strided_slice %222 {offsets = [0, 0], sizes = [2, 32], strides = [1, 1]} : vector<2x64xf32> to vector<2x32xf32>
    %224 = vector.extract_strided_slice %222 {offsets = [0, 32], sizes = [2, 32], strides = [1, 1]} : vector<2x64xf32> to vector<2x32xf32>
    %225 = vector.extract_strided_slice %213 {offsets = [0, 64], sizes = [2, 32], strides = [1, 1]} : vector<2x96xf32> to vector<2x32xf32>
    %226 = arith.mulf %223, %188 : vector<2x32xf32>
    %cst_62 = arith.constant dense<0.000000e+00> : vector<2x32xf32>
    %227 = tpu.matmul %226, %1, %cst_62 {dimension_numbers = #tpu.dot_dimension_numbers<[1], [0], [0], [1], [0, 0, 1, 1], [], []>} : vector<2x32xf32>, vector<32x32xf32>, vector<2x32xf32> -> vector<2x32xf32>
    %228 = arith.addf %225, %227 : vector<2x32xf32>
    %229 = arith.addf %228, %7 : vector<2x32xf32>
    %230 = math.tanh %229 : vector<2x32xf32>
    %231 = arith.mulf %224, %188 : vector<2x32xf32>
    %cst_63 = arith.constant 1.000000e+00 : f32
    %232 = vector.broadcast %cst_63 : f32 to vector<2x32xf32>
    %233 = arith.subf %232, %224 : vector<2x32xf32>
    %234 = arith.mulf %233, %230 : vector<2x32xf32>
    %235 = arith.addf %231, %234 : vector<2x32xf32>
    %cst_64 = arith.constant dense<0.000000e+00> : vector<2x96xf32>
    %236 = tpu.matmul %235, %8, %cst_64 {dimension_numbers = #tpu.dot_dimension_numbers<[1], [0], [0], [1], [0, 0, 1, 1], [], []>} : vector<2x32xf32>, vector<32x96xf32>, vector<2x96xf32> -> vector<2x96xf32>
    %cst_65 = arith.constant dense<0.000000e+00> : vector<2x64xf32>
    %237 = tpu.matmul %211, %9, %cst_65 {dimension_numbers = #tpu.dot_dimension_numbers<[1], [0], [0], [1], [0, 0, 1, 1], [], []>} : vector<2x32xf32>, vector<32x64xf32>, vector<2x64xf32> -> vector<2x64xf32>
    %238 = vector.extract_strided_slice %236 {offsets = [0, 0], sizes = [2, 64], strides = [1, 1]} : vector<2x96xf32> to vector<2x64xf32>
    %239 = arith.addf %238, %237 : vector<2x64xf32>
    %240 = arith.addf %239, %13 : vector<2x64xf32>
    %241 = arith.negf %240 : vector<2x64xf32>
    %242 = math.exp %241 : vector<2x64xf32>
    %cst_66 = arith.constant 1.000000e+00 : f32
    %243 = vector.broadcast %cst_66 : f32 to vector<2x64xf32>
    %244 = arith.addf %243, %242 : vector<2x64xf32>
    %245 = arith.divf %243, %244 : vector<2x64xf32>
    %246 = vector.extract_strided_slice %245 {offsets = [0, 0], sizes = [2, 32], strides = [1, 1]} : vector<2x64xf32> to vector<2x32xf32>
    %247 = vector.extract_strided_slice %245 {offsets = [0, 32], sizes = [2, 32], strides = [1, 1]} : vector<2x64xf32> to vector<2x32xf32>
    %248 = vector.extract_strided_slice %236 {offsets = [0, 64], sizes = [2, 32], strides = [1, 1]} : vector<2x96xf32> to vector<2x32xf32>
    %249 = arith.mulf %246, %211 : vector<2x32xf32>
    %cst_67 = arith.constant dense<0.000000e+00> : vector<2x32xf32>
    %250 = tpu.matmul %249, %10, %cst_67 {dimension_numbers = #tpu.dot_dimension_numbers<[1], [0], [0], [1], [0, 0, 1, 1], [], []>} : vector<2x32xf32>, vector<32x32xf32>, vector<2x32xf32> -> vector<2x32xf32>
    %251 = arith.addf %248, %250 : vector<2x32xf32>
    %252 = arith.addf %251, %16 : vector<2x32xf32>
    %253 = math.tanh %252 : vector<2x32xf32>
    %254 = arith.mulf %247, %211 : vector<2x32xf32>
    %cst_68 = arith.constant 1.000000e+00 : f32
    %255 = vector.broadcast %cst_68 : f32 to vector<2x32xf32>
    %256 = arith.subf %255, %247 : vector<2x32xf32>
    %257 = arith.mulf %256, %253 : vector<2x32xf32>
    %258 = arith.addf %254, %257 : vector<2x32xf32>
    %259 = vector.extract_strided_slice %21 {offsets = [0, 5, 0], sizes = [2, 1, 96], strides = [1, 1, 1]} : vector<2x8x96xf32> to vector<2x1x96xf32>
    %260 = vector.shape_cast %259 : vector<2x1x96xf32> to vector<2x96xf32>
    %cst_69 = arith.constant dense<0.000000e+00> : vector<2x64xf32>
    %261 = tpu.matmul %235, %0, %cst_69 {dimension_numbers = #tpu.dot_dimension_numbers<[1], [0], [0], [1], [0, 0, 1, 1], [], []>} : vector<2x32xf32>, vector<32x64xf32>, vector<2x64xf32> -> vector<2x64xf32>
    %262 = vector.extract_strided_slice %260 {offsets = [0, 0], sizes = [2, 64], strides = [1, 1]} : vector<2x96xf32> to vector<2x64xf32>
    %263 = arith.addf %262, %261 : vector<2x64xf32>
    %264 = arith.addf %263, %4 : vector<2x64xf32>
    %265 = arith.negf %264 : vector<2x64xf32>
    %266 = math.exp %265 : vector<2x64xf32>
    %cst_70 = arith.constant 1.000000e+00 : f32
    %267 = vector.broadcast %cst_70 : f32 to vector<2x64xf32>
    %268 = arith.addf %267, %266 : vector<2x64xf32>
    %269 = arith.divf %267, %268 : vector<2x64xf32>
    %270 = vector.extract_strided_slice %269 {offsets = [0, 0], sizes = [2, 32], strides = [1, 1]} : vector<2x64xf32> to vector<2x32xf32>
    %271 = vector.extract_strided_slice %269 {offsets = [0, 32], sizes = [2, 32], strides = [1, 1]} : vector<2x64xf32> to vector<2x32xf32>
    %272 = vector.extract_strided_slice %260 {offsets = [0, 64], sizes = [2, 32], strides = [1, 1]} : vector<2x96xf32> to vector<2x32xf32>
    %273 = arith.mulf %270, %235 : vector<2x32xf32>
    %cst_71 = arith.constant dense<0.000000e+00> : vector<2x32xf32>
    %274 = tpu.matmul %273, %1, %cst_71 {dimension_numbers = #tpu.dot_dimension_numbers<[1], [0], [0], [1], [0, 0, 1, 1], [], []>} : vector<2x32xf32>, vector<32x32xf32>, vector<2x32xf32> -> vector<2x32xf32>
    %275 = arith.addf %272, %274 : vector<2x32xf32>
    %276 = arith.addf %275, %7 : vector<2x32xf32>
    %277 = math.tanh %276 : vector<2x32xf32>
    %278 = arith.mulf %271, %235 : vector<2x32xf32>
    %cst_72 = arith.constant 1.000000e+00 : f32
    %279 = vector.broadcast %cst_72 : f32 to vector<2x32xf32>
    %280 = arith.subf %279, %271 : vector<2x32xf32>
    %281 = arith.mulf %280, %277 : vector<2x32xf32>
    %282 = arith.addf %278, %281 : vector<2x32xf32>
    %cst_73 = arith.constant dense<0.000000e+00> : vector<2x96xf32>
    %283 = tpu.matmul %282, %8, %cst_73 {dimension_numbers = #tpu.dot_dimension_numbers<[1], [0], [0], [1], [0, 0, 1, 1], [], []>} : vector<2x32xf32>, vector<32x96xf32>, vector<2x96xf32> -> vector<2x96xf32>
    %cst_74 = arith.constant dense<0.000000e+00> : vector<2x64xf32>
    %284 = tpu.matmul %258, %9, %cst_74 {dimension_numbers = #tpu.dot_dimension_numbers<[1], [0], [0], [1], [0, 0, 1, 1], [], []>} : vector<2x32xf32>, vector<32x64xf32>, vector<2x64xf32> -> vector<2x64xf32>
    %285 = vector.extract_strided_slice %283 {offsets = [0, 0], sizes = [2, 64], strides = [1, 1]} : vector<2x96xf32> to vector<2x64xf32>
    %286 = arith.addf %285, %284 : vector<2x64xf32>
    %287 = arith.addf %286, %13 : vector<2x64xf32>
    %288 = arith.negf %287 : vector<2x64xf32>
    %289 = math.exp %288 : vector<2x64xf32>
    %cst_75 = arith.constant 1.000000e+00 : f32
    %290 = vector.broadcast %cst_75 : f32 to vector<2x64xf32>
    %291 = arith.addf %290, %289 : vector<2x64xf32>
    %292 = arith.divf %290, %291 : vector<2x64xf32>
    %293 = vector.extract_strided_slice %292 {offsets = [0, 0], sizes = [2, 32], strides = [1, 1]} : vector<2x64xf32> to vector<2x32xf32>
    %294 = vector.extract_strided_slice %292 {offsets = [0, 32], sizes = [2, 32], strides = [1, 1]} : vector<2x64xf32> to vector<2x32xf32>
    %295 = vector.extract_strided_slice %283 {offsets = [0, 64], sizes = [2, 32], strides = [1, 1]} : vector<2x96xf32> to vector<2x32xf32>
    %296 = arith.mulf %293, %258 : vector<2x32xf32>
    %cst_76 = arith.constant dense<0.000000e+00> : vector<2x32xf32>
    %297 = tpu.matmul %296, %10, %cst_76 {dimension_numbers = #tpu.dot_dimension_numbers<[1], [0], [0], [1], [0, 0, 1, 1], [], []>} : vector<2x32xf32>, vector<32x32xf32>, vector<2x32xf32> -> vector<2x32xf32>
    %298 = arith.addf %295, %297 : vector<2x32xf32>
    %299 = arith.addf %298, %16 : vector<2x32xf32>
    %300 = math.tanh %299 : vector<2x32xf32>
    %301 = arith.mulf %294, %258 : vector<2x32xf32>
    %cst_77 = arith.constant 1.000000e+00 : f32
    %302 = vector.broadcast %cst_77 : f32 to vector<2x32xf32>
    %303 = arith.subf %302, %294 : vector<2x32xf32>
    %304 = arith.mulf %303, %300 : vector<2x32xf32>
    %305 = arith.addf %301, %304 : vector<2x32xf32>
    %306 = vector.extract_strided_slice %21 {offsets = [0, 6, 0], sizes = [2, 1, 96], strides = [1, 1, 1]} : vector<2x8x96xf32> to vector<2x1x96xf32>
    %307 = vector.shape_cast %306 : vector<2x1x96xf32> to vector<2x96xf32>
    %cst_78 = arith.constant dense<0.000000e+00> : vector<2x64xf32>
    %308 = tpu.matmul %282, %0, %cst_78 {dimension_numbers = #tpu.dot_dimension_numbers<[1], [0], [0], [1], [0, 0, 1, 1], [], []>} : vector<2x32xf32>, vector<32x64xf32>, vector<2x64xf32> -> vector<2x64xf32>
    %309 = vector.extract_strided_slice %307 {offsets = [0, 0], sizes = [2, 64], strides = [1, 1]} : vector<2x96xf32> to vector<2x64xf32>
    %310 = arith.addf %309, %308 : vector<2x64xf32>
    %311 = arith.addf %310, %4 : vector<2x64xf32>
    %312 = arith.negf %311 : vector<2x64xf32>
    %313 = math.exp %312 : vector<2x64xf32>
    %cst_79 = arith.constant 1.000000e+00 : f32
    %314 = vector.broadcast %cst_79 : f32 to vector<2x64xf32>
    %315 = arith.addf %314, %313 : vector<2x64xf32>
    %316 = arith.divf %314, %315 : vector<2x64xf32>
    %317 = vector.extract_strided_slice %316 {offsets = [0, 0], sizes = [2, 32], strides = [1, 1]} : vector<2x64xf32> to vector<2x32xf32>
    %318 = vector.extract_strided_slice %316 {offsets = [0, 32], sizes = [2, 32], strides = [1, 1]} : vector<2x64xf32> to vector<2x32xf32>
    %319 = vector.extract_strided_slice %307 {offsets = [0, 64], sizes = [2, 32], strides = [1, 1]} : vector<2x96xf32> to vector<2x32xf32>
    %320 = arith.mulf %317, %282 : vector<2x32xf32>
    %cst_80 = arith.constant dense<0.000000e+00> : vector<2x32xf32>
    %321 = tpu.matmul %320, %1, %cst_80 {dimension_numbers = #tpu.dot_dimension_numbers<[1], [0], [0], [1], [0, 0, 1, 1], [], []>} : vector<2x32xf32>, vector<32x32xf32>, vector<2x32xf32> -> vector<2x32xf32>
    %322 = arith.addf %319, %321 : vector<2x32xf32>
    %323 = arith.addf %322, %7 : vector<2x32xf32>
    %324 = math.tanh %323 : vector<2x32xf32>
    %325 = arith.mulf %318, %282 : vector<2x32xf32>
    %cst_81 = arith.constant 1.000000e+00 : f32
    %326 = vector.broadcast %cst_81 : f32 to vector<2x32xf32>
    %327 = arith.subf %326, %318 : vector<2x32xf32>
    %328 = arith.mulf %327, %324 : vector<2x32xf32>
    %329 = arith.addf %325, %328 : vector<2x32xf32>
    %cst_82 = arith.constant dense<0.000000e+00> : vector<2x96xf32>
    %330 = tpu.matmul %329, %8, %cst_82 {dimension_numbers = #tpu.dot_dimension_numbers<[1], [0], [0], [1], [0, 0, 1, 1], [], []>} : vector<2x32xf32>, vector<32x96xf32>, vector<2x96xf32> -> vector<2x96xf32>
    %cst_83 = arith.constant dense<0.000000e+00> : vector<2x64xf32>
    %331 = tpu.matmul %305, %9, %cst_83 {dimension_numbers = #tpu.dot_dimension_numbers<[1], [0], [0], [1], [0, 0, 1, 1], [], []>} : vector<2x32xf32>, vector<32x64xf32>, vector<2x64xf32> -> vector<2x64xf32>
    %332 = vector.extract_strided_slice %330 {offsets = [0, 0], sizes = [2, 64], strides = [1, 1]} : vector<2x96xf32> to vector<2x64xf32>
    %333 = arith.addf %332, %331 : vector<2x64xf32>
    %334 = arith.addf %333, %13 : vector<2x64xf32>
    %335 = arith.negf %334 : vector<2x64xf32>
    %336 = math.exp %335 : vector<2x64xf32>
    %cst_84 = arith.constant 1.000000e+00 : f32
    %337 = vector.broadcast %cst_84 : f32 to vector<2x64xf32>
    %338 = arith.addf %337, %336 : vector<2x64xf32>
    %339 = arith.divf %337, %338 : vector<2x64xf32>
    %340 = vector.extract_strided_slice %339 {offsets = [0, 0], sizes = [2, 32], strides = [1, 1]} : vector<2x64xf32> to vector<2x32xf32>
    %341 = vector.extract_strided_slice %339 {offsets = [0, 32], sizes = [2, 32], strides = [1, 1]} : vector<2x64xf32> to vector<2x32xf32>
    %342 = vector.extract_strided_slice %330 {offsets = [0, 64], sizes = [2, 32], strides = [1, 1]} : vector<2x96xf32> to vector<2x32xf32>
    %343 = arith.mulf %340, %305 : vector<2x32xf32>
    %cst_85 = arith.constant dense<0.000000e+00> : vector<2x32xf32>
    %344 = tpu.matmul %343, %10, %cst_85 {dimension_numbers = #tpu.dot_dimension_numbers<[1], [0], [0], [1], [0, 0, 1, 1], [], []>} : vector<2x32xf32>, vector<32x32xf32>, vector<2x32xf32> -> vector<2x32xf32>
    %345 = arith.addf %342, %344 : vector<2x32xf32>
    %346 = arith.addf %345, %16 : vector<2x32xf32>
    %347 = math.tanh %346 : vector<2x32xf32>
    %348 = arith.mulf %341, %305 : vector<2x32xf32>
    %cst_86 = arith.constant 1.000000e+00 : f32
    %349 = vector.broadcast %cst_86 : f32 to vector<2x32xf32>
    %350 = arith.subf %349, %341 : vector<2x32xf32>
    %351 = arith.mulf %350, %347 : vector<2x32xf32>
    %352 = arith.addf %348, %351 : vector<2x32xf32>
    %353 = vector.extract_strided_slice %21 {offsets = [0, 7, 0], sizes = [2, 1, 96], strides = [1, 1, 1]} : vector<2x8x96xf32> to vector<2x1x96xf32>
    %354 = vector.shape_cast %353 : vector<2x1x96xf32> to vector<2x96xf32>
    %cst_87 = arith.constant dense<0.000000e+00> : vector<2x64xf32>
    %355 = tpu.matmul %329, %0, %cst_87 {dimension_numbers = #tpu.dot_dimension_numbers<[1], [0], [0], [1], [0, 0, 1, 1], [], []>} : vector<2x32xf32>, vector<32x64xf32>, vector<2x64xf32> -> vector<2x64xf32>
    %356 = vector.extract_strided_slice %354 {offsets = [0, 0], sizes = [2, 64], strides = [1, 1]} : vector<2x96xf32> to vector<2x64xf32>
    %357 = arith.addf %356, %355 : vector<2x64xf32>
    %358 = arith.addf %357, %4 : vector<2x64xf32>
    %359 = arith.negf %358 : vector<2x64xf32>
    %360 = math.exp %359 : vector<2x64xf32>
    %cst_88 = arith.constant 1.000000e+00 : f32
    %361 = vector.broadcast %cst_88 : f32 to vector<2x64xf32>
    %362 = arith.addf %361, %360 : vector<2x64xf32>
    %363 = arith.divf %361, %362 : vector<2x64xf32>
    %364 = vector.extract_strided_slice %363 {offsets = [0, 0], sizes = [2, 32], strides = [1, 1]} : vector<2x64xf32> to vector<2x32xf32>
    %365 = vector.extract_strided_slice %363 {offsets = [0, 32], sizes = [2, 32], strides = [1, 1]} : vector<2x64xf32> to vector<2x32xf32>
    %366 = vector.extract_strided_slice %354 {offsets = [0, 64], sizes = [2, 32], strides = [1, 1]} : vector<2x96xf32> to vector<2x32xf32>
    %367 = arith.mulf %364, %329 : vector<2x32xf32>
    %cst_89 = arith.constant dense<0.000000e+00> : vector<2x32xf32>
    %368 = tpu.matmul %367, %1, %cst_89 {dimension_numbers = #tpu.dot_dimension_numbers<[1], [0], [0], [1], [0, 0, 1, 1], [], []>} : vector<2x32xf32>, vector<32x32xf32>, vector<2x32xf32> -> vector<2x32xf32>
    %369 = arith.addf %366, %368 : vector<2x32xf32>
    %370 = arith.addf %369, %7 : vector<2x32xf32>
    %371 = math.tanh %370 : vector<2x32xf32>
    %372 = arith.mulf %365, %329 : vector<2x32xf32>
    %cst_90 = arith.constant 1.000000e+00 : f32
    %373 = vector.broadcast %cst_90 : f32 to vector<2x32xf32>
    %374 = arith.subf %373, %365 : vector<2x32xf32>
    %375 = arith.mulf %374, %371 : vector<2x32xf32>
    %376 = arith.addf %372, %375 : vector<2x32xf32>
    %cst_91 = arith.constant dense<0.000000e+00> : vector<2x96xf32>
    %377 = tpu.matmul %376, %8, %cst_91 {dimension_numbers = #tpu.dot_dimension_numbers<[1], [0], [0], [1], [0, 0, 1, 1], [], []>} : vector<2x32xf32>, vector<32x96xf32>, vector<2x96xf32> -> vector<2x96xf32>
    %cst_92 = arith.constant dense<0.000000e+00> : vector<2x64xf32>
    %378 = tpu.matmul %352, %9, %cst_92 {dimension_numbers = #tpu.dot_dimension_numbers<[1], [0], [0], [1], [0, 0, 1, 1], [], []>} : vector<2x32xf32>, vector<32x64xf32>, vector<2x64xf32> -> vector<2x64xf32>
    %379 = vector.extract_strided_slice %377 {offsets = [0, 0], sizes = [2, 64], strides = [1, 1]} : vector<2x96xf32> to vector<2x64xf32>
    %380 = arith.addf %379, %378 : vector<2x64xf32>
    %381 = arith.addf %380, %13 : vector<2x64xf32>
    %382 = arith.negf %381 : vector<2x64xf32>
    %383 = math.exp %382 : vector<2x64xf32>
    %cst_93 = arith.constant 1.000000e+00 : f32
    %384 = vector.broadcast %cst_93 : f32 to vector<2x64xf32>
    %385 = arith.addf %384, %383 : vector<2x64xf32>
    %386 = arith.divf %384, %385 : vector<2x64xf32>
    %387 = vector.extract_strided_slice %386 {offsets = [0, 0], sizes = [2, 32], strides = [1, 1]} : vector<2x64xf32> to vector<2x32xf32>
    %388 = vector.extract_strided_slice %386 {offsets = [0, 32], sizes = [2, 32], strides = [1, 1]} : vector<2x64xf32> to vector<2x32xf32>
    %389 = vector.extract_strided_slice %377 {offsets = [0, 64], sizes = [2, 32], strides = [1, 1]} : vector<2x96xf32> to vector<2x32xf32>
    %390 = arith.mulf %387, %352 : vector<2x32xf32>
    %cst_94 = arith.constant dense<0.000000e+00> : vector<2x32xf32>
    %391 = tpu.matmul %390, %10, %cst_94 {dimension_numbers = #tpu.dot_dimension_numbers<[1], [0], [0], [1], [0, 0, 1, 1], [], []>} : vector<2x32xf32>, vector<32x32xf32>, vector<2x32xf32> -> vector<2x32xf32>
    %392 = arith.addf %389, %391 : vector<2x32xf32>
    %393 = arith.addf %392, %16 : vector<2x32xf32>
    %394 = math.tanh %393 : vector<2x32xf32>
    %395 = arith.mulf %388, %352 : vector<2x32xf32>
    %cst_95 = arith.constant 1.000000e+00 : f32
    %396 = vector.broadcast %cst_95 : f32 to vector<2x32xf32>
    %397 = arith.subf %396, %388 : vector<2x32xf32>
    %398 = arith.mulf %397, %394 : vector<2x32xf32>
    %399 = arith.addf %395, %398 : vector<2x32xf32>
    %c0_96 = arith.constant 0 : index
    %c0_97 = arith.constant 0 : index
    %400 = vector.load %arg11[%c0_96, %c0_97] : memref<32x18xf32, #tpu.memory_space<vmem>>, vector<32x18xf32>
    %cst_98 = arith.constant dense<0.000000e+00> : vector<2x18xf32>
    %401 = tpu.matmul %399, %400, %cst_98 {dimension_numbers = #tpu.dot_dimension_numbers<[1], [0], [0], [1], [0, 0, 1, 1], [], []>} : vector<2x32xf32>, vector<32x18xf32>, vector<2x18xf32> -> vector<2x18xf32>
    %c0_99 = arith.constant 0 : index
    %c0_100 = arith.constant 0 : index
    %402 = vector.load %arg12[%c0_99, %c0_100] : memref<1x18xf32, #tpu.memory_space<vmem>>, vector<1x18xf32>
    %403 = vector.broadcast %402 : vector<1x18xf32> to vector<2x18xf32>
    %404 = arith.addf %401, %403 : vector<2x18xf32>
    %c0_101 = arith.constant 0 : index
    %c0_102 = arith.constant 0 : index
    %405 = vector.load %arg13[%c0_101, %c0_102] : memref<2x18xf32, #tpu.memory_space<vmem>>, vector<2x18xf32>
    tpu.vector_store %arg13[%c0_101, %c0_102], %404 {strides = array<i32>} : memref<2x18xf32, #tpu.memory_space<vmem>>, vector<2x18xf32>,
    return
  }
}

</mosaic_0001>

<bundles_post_ra>
// kernel: tpu_custom_call.1
= control target key start
LH: loop header
LB: loop body
LE: loop exit
PB: predicated region body
PF: predicated region fallthrough
CT: control target
= control target key end

     0   :  { %18 = vsyncpa [#allocation3], 0  ;;  %s3515_s0 = inlined_call_operand.vmem [shape: f32[2,8,16], index: 0, kind: input, shape index: {}]   ;;  %s3516_s1 = inlined_call_operand.hbm [shape: f32[16,96], index: 1, kind: input, shape index: {}]   ;;  %s3517_s2 = inlined_call_operand.vmem [shape: f32[32,64], index: 2, kind: input, shape index: {}]   ;;  %s3518_s3 = inlined_call_operand.hbm [shape: f32[32,32], index: 3, kind: input, shape index: {}]   ;;  %s3519_s4 = inlined_call_operand.vmem [shape: f32[1,64], index: 4, kind: input, shape index: {}]   ;;  %s3520_s5 = inlined_call_operand.vmem [shape: f32[1,32], index: 5, kind: input, shape index: {}]   ;;  %s3521_s6 = inlined_call_operand.hbm [shape: f32[32,96], index: 6, kind: input, shape index: {}]   ;;  %s3522_s7 = inlined_call_operand.hbm [shape: f32[32,64], index: 7, kind: input, shape index: {}]   ;;  %s3523_s8 = inlined_call_operand.hbm [shape: f32[32,32], index: 8, kind: input, shape index: {}]   ;;  %s3524_s9 = inlined_call_operand.vmem [shape: f32[1,64], index: 9, kind: input, shape index: {}]   ;;  %s3525_s10 = inlined_call_operand.vmem [shape: f32[1,32], index: 10, kind: input, shape index: {}]   ;;  %s3526_s11 = inlined_call_operand.vmem [shape: f32[32,18], index: 11, kind: input, shape index: {}]   ;;  %s3527_s12 = inlined_call_operand.vmem [shape: f32[1,18], index: 12, kind: input, shape index: {}]   ;;  %s3528_s13 = inlined_call_operand.hbm [shape: f32[2,18], index: 13, kind: output, shape index: {}]  }
   0x1   :  { %19 = vsyncpa [#allocation6], 0 }
   0x2   :  { %20 = vsyncpa [#allocation9], 0 }
   0x3   :  { %21 = vsyncpa [#allocation4], 0  ;;  %s43_s27 = sshll.u32 %s3518_s3, 4  ;;  %s2644_s28 = smov [#allocation5]   ;;  %s44_s27 = int_to_ptr.hbm [resolvable:$true] %s43_s27 }
   0x4   :  { %s45_s29 = sshll.u32 %s2644_s28, 4  ;;  %s73_s15 = sshll.u32 %s3522_s7, 4  ;;  %s46_s29 = int_to_ptr.vmem [resolvable:$true] %s45_s29  ;;  %s74_s15 = int_to_ptr.hbm [resolvable:$true] %s73_s15 }
   0x5   :  { %s2645_s16 = smov 128   ;;  %s2646_s17 = smov 8  }
   0x6   :  { %51 = dma.hbm_to_vmem [thread:$0]  %s44_s27, 512, %s46_s29, [#allocation6], %s2645_s16, %s2645_s16, %s2646_s17  }
   0x7   :  { %s2647_s18 = smov [#allocation8]   ;;  %s28_s22 = sshll.u32 %s3516_s1, 4  ;;  %s29_s22 = int_to_ptr.hbm [resolvable:$true] %s28_s22 }
   0x8   :  { %s75_s19 = sshll.u32 %s2647_s18, 4  ;;  %s60_s24 = sshll.u32 %s3521_s6, 4  ;;  %s76_s19 = int_to_ptr.vmem [resolvable:$true] %s75_s19  ;;  %s61_s24 = int_to_ptr.hbm [resolvable:$true] %s60_s24 }
   0x9   :  { %81 = dma.hbm_to_vmem [thread:$0]  %s74_s15, 512, %s76_s19, [#allocation9], %s2645_s16, %s2645_s16, %s2646_s17  }
   0xa   :  { %s2648_s25 = smov [#allocation2]   ;;  %s2649_s7 = smov [#allocation7]  }
   0xb   :  { %s30_s26 = sshll.u32 %s2648_s25, 4  ;;  %s62_s27 = sshll.u32 %s2649_s7, 4  ;;  %s31_s26 = int_to_ptr.vmem [resolvable:$true] %s30_s26  ;;  %s63_s27 = int_to_ptr.vmem [resolvable:$true] %s62_s27 }
   0xc   :  { %36 = dma.hbm_to_vmem [thread:$0]  %s29_s22, 256, %s31_s26, [#allocation3], %s2645_s16, %s2645_s16, %s2646_s17  }
   0xd   :  { %s86_s30 = sshll.u32 %s3523_s8, 4  ;;  %s2650_s1 = smov [#allocation10]   ;;  %s87_s30 = int_to_ptr.hbm [resolvable:$true] %s86_s30 }
   0xe   :  { %68 = dma.hbm_to_vmem [thread:$0]  %s61_s24, 512, %s63_s27, [#allocation6], %s2645_s16, %s2645_s16, %s2646_s17  }
   0xf   :  { %s88_s14 = sshll.u32 %s2650_s1, 4  ;;  %s89_s14 = int_to_ptr.vmem [resolvable:$true] %s88_s14 }
  0x10   :  { %94 = dma.hbm_to_vmem [thread:$0]  %s87_s30, 512, %s89_s14, [#allocation9], %s2645_s16, %s2645_s16, %s2646_s17  }
  0x11   :  { %2636 = dma.done.wait [#allocation3], 256  }
  0x12   :  { %2637 = vsyncadd [#allocation3], 4294967040 }
  0x13   :  { %2638 = dma.done.wait [#allocation6], 1024  }
  0x14   :  { %2639 = vsyncadd [#allocation6], 4294966272 }
  0x15   :  { %2640 = dma.done.wait [#allocation9], 1024  }
  0x16   :  { %2641 = vsyncadd [#allocation9], 4294966272  ;;  %v160_v0 = vld [vmem:[#allocation2 + $0x8] sm:$0xff]  ;;  %v2743_v1 = vld [vmem:[%s3517_s2 + $0x18] sm:$0xff]  ;;  %vm161_vm0 = vcmask 130048   ;;  %v2651_v7 = vmov 0.0  }
  0x17   :  { %v159_v2 = vld [vmem:[#allocation2] sm:$0xff]  ;;  %182 = vmatpush.msra.mxu0 %v160_v0  ;;  %207 = vmatpush.msra.mxu1 %v2743_v1  ;;  %v2749_v3 = vld [vmem:[%s3517_s2 + $0x10] sm:$0xff]  ;;  %v2757_v5 = vld [vmem:[%s3517_s2 + $0x8] sm:$0xff]  ;;  %vm266_vm9 = vcmask 1041409   ;;  %vm191_vm10 = vcmask 261120   ;;  %s2652_s7 = smov 64  }
  0x18   :  { %v157_v4 = vld [vmem:[%s3515_s0] sm:$0xff]  ;;  %v158_v8 = vld [vmem:[%s3515_s0 + $0x8] sm:$0xff]  ;;  %v2777_v11 = vld [vmem:[#allocation5 + $0x8] sm:$0xff]  ;;  %s2654_s28 = smov [#allocation11]  }
  0x19   :  { %183 = vmatpush.msra.mxu0 %v159_v2  ;;  %208 = vmatpush.msra.mxu1 %v2749_v3  ;;  %v2763_v6 = vld [vmem:[%s3517_s2] sm:$0xff]  ;;  %v2771_v9 = vld [vmem:[#allocation5 + $0x18] sm:$0xff]  ;;  %v2781_v12 = vld [vmem:[#allocation5] sm:$0xff]  ;;  %s2230_s29 = sshll.u32 %s2654_s28, 4  ;;  %s2231_s29 = int_to_ptr.vmem [resolvable:$true] %s2230_s29 }
  0x1a   :  { %2244 = vmatmul.msk.f32.vlgmr.msra.gmra.mxu0 %vm161_vm0, %v157_v4  ;;  %v2773_v10 = vld [vmem:[#allocation5 + $0x10] sm:$0xff]  ;;  %282 = vmatpush.msra.mxu2 %v2771_v9  ;;  %v2820_v0 = vld [vmem:[#allocation7 + $0x18] sm:$0xff] }
  0x1b   :  { %209 = vmatpush.msra.mxu1 %v2757_v5  ;;  %524 = vmatpush.msrb.mxu0 %v2771_v9  ;;  %v2796_v14 = vld [vmem:[%s3519_s4] ss:$0 sm:$0xff]  ;;  %v2825_v4 = vld [vmem:[#allocation8 + $0x18] sm:$0xff] }
  0x1c   :  { %283 = vmatpush.msra.mxu2 %v2773_v10  ;;  %v2321_v52 = vld [vmem:[%s3520_s5] ss:$0 sm:$0xff]  ;;  %s2653_s5 = smov 96   ;;  %341 = vmatpush.msra.mxu3 %v2820_v0 }
  0x1d   :  { %210 = vmatpush.msra.mxu1 %v2763_v6  ;;  %525 = vmatpush.msrb.mxu0 %v2773_v10  ;;  %v2822_v2 = vld [vmem:[#allocation7 + $0x10] sm:$0xff] }
  0x1e   :  { %211 = vmatmul.f32.vlgmr.msra.gmra.mxu1 %v2651_v7  ;;  %284 = vmatpush.msra.mxu2 %v2777_v11 }
  0x1f   :  { %526 = vmatpush.msrb.mxu0 %v2777_v11  ;;  %300 = vrot.lane.b32.xlu1 %v2321_v52, %s2652_s7 }
  0x20   :  { %285 = vmatpush.msra.mxu2 %v2781_v12  ;;  %361 = vmatpush.msrb.mxu1 %v2825_v4 }
  0x21   :  { %527 = vmatpush.msrb.mxu0 %v2781_v12  ;;  %342 = vmatpush.msra.mxu3 %v2822_v2 }
  0x22   :  { %2245 = vmatmul.msk.f32.gmra.mxu0 %vm161_vm0, %v158_v8  ;;  %v2827_v8 = vld [vmem:[#allocation7 + $0x8] sm:$0xff] }
  0x23   :  { %690 = vmatpush.msra.mxu0 %v2743_v1  ;;  %343 = vmatpush.msra.mxu3 %v2827_v8 }
  0x25   :  { %691 = vmatpush.msra.mxu0 %v2749_v3 }
  0x27   :  { %692 = vmatpush.msra.mxu0 %v2757_v5 }
  0x29   :  { %693 = vmatpush.msra.mxu0 %v2763_v6 }
  0x91   :  { %v2812_v56 = vpop.permute.xlu1 %300 }
  0x97   :  { %v2789_v13 = vpop.f32.mrf.mxu0 }
  0x9b   :  { %v212_v15 = vpop.f32.mrf.mxu1 }
  0x9c   :  { %v216_v16 = vrot.slane %v212_v15, 1  ;;  %v219_v17 = vadd.f32 %v212_v15, %v2789_v13  ;;  %v2831_v15 = vld [vmem:[#allocation7] sm:$0xff] }
  0x9d   :  { %344 = vmatpush.msra.mxu3 %v2831_v15 }
  0x9e   :  { %v221_v18 = vadd.f32 %v2796_v14, %v219_v17 }
  0x9f   :  { %v2800_v19 = vpop.f32.mrf.mxu0  ;;  %443 = vmatpush.msrb.mxu3 %v2743_v1 }
  0xa0   :  { %v2246_v20 = vmul.f32 -1.442695, %v221_v18  ;;  %v220_v21 = vadd.f32 %v216_v16, %v2800_v19 }
  0xa1   :  { %444 = vmatpush.msrb.mxu3 %v2749_v3 }
  0xa2   :  { %2325 = vpow2.f32 %v2246_v20  ;;  %v222_v22 = vadd.f32 %v2796_v14, %v220_v21 }
  0xa3   :  { %445 = vmatpush.msrb.mxu3 %v2757_v5 }
  0xa4   :  { %v2247_v23 = vmul.f32 -1.442695, %v222_v22 }
  0xa5   :  { %446 = vmatpush.msrb.mxu3 %v2763_v6 }
  0xa6   :  { %2327 = vpow2.f32 %v2247_v23 }
  0xa8   :  { %v2326_v24 = vpop.eup %2325 }
  0xa9   :  { %v229_v25 = vadd.f32 1.0, %v2326_v24 }
  0xab   :  { %2329 = vrcp.f32 %v229_v25  ;;  %vm236_vm2 = vweird.f32 %v229_v25  ;;  %v242_v36 = vand.u32 2147483648, %v229_v25  ;;  %v240_v38 = vand.u32 2147483647, %v229_v25 }
  0xac   :  { %v2328_v26 = vpop.eup %2327 }
  0xad   :  { %v230_v27 = vadd.f32 1.0, %v2328_v26  ;;  %v243_v43 = vor.u32 1.1754944e-38, %v242_v36  ;;  %vm241_vm7 = vcmp.eq.f32.partialorder %v240_v38, 8.507059e+37  ;;  %v2893_v38 = vld [vmem:[#allocation10] sm:$0xff] }
  0xaf   :  { %2331 = vrcp.f32 %v230_v27  ;;  %v257_v37 = vand.u32 2147483648, %v230_v27  ;;  %v255_v40 = vand.u32 2147483647, %v230_v27  ;;  %vm251_vm5 = vweird.f32 %v230_v27 }
  0xb1   :  { %v2330_v28 = vpop.eup %2329  ;;  %v258_v44 = vor.u32 1.1754944e-38, %v257_v37  ;;  %vm256_vm8 = vcmp.eq.f32.partialorder %v255_v40, 8.507059e+37 }
  0xb2   :  { %v232_v29 = vmul.f32 %v2330_v28, %v229_v25  ;;  %vm237_vm1 = vweird.f32 %v2330_v28 }
  0xb3   :  { %vm238_vm4 = vmor %vm236_vm2, %vm237_vm1 }
  0xb4   :  { %v233_v30 = vsub.f32 1.0, %v232_v29  ;;  %v2855_v29 = vld [vmem:[#allocation8 + $0x8] sm:$0xff] }
  0xb5   :  { %v2332_v31 = vpop.eup %2331 }
  0xb6   :  { %v234_v32 = vmul.f32 %v2330_v28, %v233_v30  ;;  %v247_v33 = vmul.f32 %v2332_v31, %v230_v27  ;;  %vm252_vm3 = vweird.f32 %v2332_v31  ;;  %v2858_v30 = vld [vmem:[#allocation8] sm:$0xff] }
  0xb7   :  { %vm253_vm6 = vmor %vm251_vm5, %vm252_vm3 }
  0xb8   :  { %v235_v34 = vadd.f32 %v2330_v28, %v234_v32  ;;  %v248_v35 = vsub.f32 1.0, %v247_v33  ;;  %v2877_v32 = vld [vmem:[#allocation10 + $0x10] sm:$0xff] }
  0xba   :  { %v249_v39 = vmul.f32 %v2332_v31, %v248_v35  ;;  %v239_v41 = vsel %vm238_vm4, %v2330_v28, %v235_v34  ;;  %v2853_v28 = vld [vmem:[#allocation8 + $0x10] sm:$0xff]  ;;  %v2886_v35 = vld [vmem:[#allocation10 + $0x8] sm:$0xff] }
  0xbb   :  { %v244_v46 = vsel %vm241_vm7, %v243_v43, %v239_v41  ;;  %362 = vmatpush.msrb.mxu1 %v2853_v28  ;;  %v2884_v34 = vld [vmem:[%s3524_s9] ss:$0 sm:$0xff] }
  0xbc   :  { %v250_v42 = vadd.f32 %v2332_v31, %v249_v39  ;;  %v261_v49 = vmul.f32 0.0, %v244_v46  ;;  %v307_v16 = vsub.f32 1.0, %v244_v46 }
  0xbd   :  { %363 = vmatpush.msrb.mxu1 %v2855_v29 }
  0xbe   :  { %v254_v45 = vsel %vm253_vm6, %v2332_v31, %v250_v42 }
  0xbf   :  { %v259_v47 = vsel %vm256_vm8, %v258_v44, %v254_v45  ;;  %364 = vmatpush.msrb.mxu1 %v2858_v30 }
  0xc0   :  { %v262_v48 = vmul.f32 0.0, %v259_v47  ;;  %v308_v22 = vsub.f32 1.0, %v259_v47  ;;  %365 = vmatmul.f32.vlgmr.msrb.gmra.mxu1 %v2651_v7  ;;  %v2873_v7 = vld [vmem:[#allocation10 + $0x18] sm:$0xff] }
  0xc1   :  { %584 = vmatpush.msra.mxu1 %v2820_v0  ;;  %406 = vmatpush.msrb.mxu2 %v2873_v7 }
  0xc2   :  { %v265_v50 = vrot.slane %v262_v48, 7 }
  0xc3   :  { %585 = vmatpush.msra.mxu1 %v2822_v2  ;;  %407 = vmatpush.msrb.mxu2 %v2877_v32 }
  0xc4   :  { %v267_v51 = vsel %vm266_vm9, %v265_v50, %v261_v49 }
  0xc5   :  { %2248 = vmatmul.msk.f32.vlgmr.msra.gmra.mxu2 %vm191_vm10, %v267_v51  ;;  %586 = vmatpush.msra.mxu1 %v2827_v8 }
  0xc6   :  { %408 = vmatpush.msrb.mxu2 %v2886_v35 }
  0xc7   :  { %587 = vmatpush.msra.mxu1 %v2831_v15 }
  0xc8   :  { %409 = vmatpush.msrb.mxu2 %v2893_v38 }
  0xc9   :  { %774 = vmatpush.msrb.mxu1 %v2771_v9 }
  0xca   :  { %609 = vmatpush.msra.mxu2 %v2825_v4 }
  0xcb   :  { %775 = vmatpush.msrb.mxu1 %v2773_v10 }
  0xcc   :  { %610 = vmatpush.msra.mxu2 %v2853_v28 }
  0xcd   :  { %776 = vmatpush.msrb.mxu1 %v2777_v11 }
  0xce   :  { %611 = vmatpush.msra.mxu2 %v2855_v29 }
  0xcf   :  { %777 = vmatpush.msrb.mxu1 %v2781_v12 }
  0xd0   :  { %612 = vmatpush.msra.mxu2 %v2858_v30 }
 0x13d   :  { %v366_v33 = vpop.f32.mrf.mxu1 }
 0x148   :  { %v287_v53 = vpop.f32.mrf.mxu2 }
 0x149   :  { %v291_v54 = vrot.slane %v287_v53, 1 }
 0x14b   :  { %294 = vrot.lane.b32.xlu0 %v291_v54, %s2652_s7 }
 0x153   :  { %292 = vrot.lane.b32.xlu0 %v287_v53, %s2652_s7 }
 0x1bd   :  { %v295_v55 = vpop.permute.xlu0 %294 }
 0x1be   :  { %v299_v57 = vadd.f32 %v295_v55, %v2800_v19 }
 0x1c0   :  { %v304_v58 = vadd.f32 %v2812_v56, %v299_v57 }
 0x1c2   :  { %2333 = vtanh.f32 %v304_v58 }
 0x1c5   :  { %v293_v59 = vpop.permute.xlu0 %292 }
 0x1c6   :  { %v298_v60 = vadd.f32 %v293_v59, %v2789_v13 }
 0x1c8   :  { %v2334_v61 = vpop.eup %2333  ;;  %v303_v62 = vadd.f32 %v2812_v56, %v298_v60 }
 0x1c9   :  { %313 = vrot.lane.b32.xlu1 %v2334_v61, %s2653_s5 }
 0x1ca   :  { %2335 = vtanh.f32 %v303_v62 }
 0x1d0   :  { %v2336_v63 = vpop.eup %2335 }
 0x1d1   :  { %311 = vrot.lane.b32.xlu2 %v2336_v63, %s2653_s5 }
 0x22b   :  { %v312_v17 = vpop.permute.xlu2 %311 }
 0x22c   :  { %v317_v18 = vmul.f32 %v312_v17, %v307_v16 }
 0x22e   :  { %v2837_v20 = vadd.f32 %v317_v18, %v261_v49 }
 0x230   :  { %v497_v21 = vrot.slane %v2837_v20, 7 }
 0x232   :  { %498 = vrot.lane.b32.xlu0 %v497_v21, %s2653_s5 }
 0x23b   :  { %v314_v23 = vpop.permute.xlu1 %313 }
 0x23c   :  { %v318_v24 = vmul.f32 %v314_v23, %v308_v22 }
 0x23e   :  { %v320_v25 = vadd.f32 %v318_v24, %v262_v48 }
 0x240   :  { %v2845_v26 = vrot.slane %v320_v25, 7 }
 0x242   :  { %500 = vrot.lane.b32.xlu1 %v2845_v26, %s2653_s5  ;;  %v324_v27 = vsel %vm266_vm9, %v2845_v26, %v2837_v20 }
 0x243   :  { %325 = vrot.lane.b32.xlu2 %v324_v27, %s2653_s5 }
 0x29d   :  { %v326_v31 = vpop.permute.xlu2 %325 }
 0x29e   :  { %2249 = vmatmul.msk.f32.vlgmr.msra.gmra.mxu3 %vm191_vm10, %v326_v31 }
 0x29f   :  { %655 = vmatpush.msra.mxu3 %v2873_v7 }
 0x2a1   :  { %656 = vmatpush.msra.mxu3 %v2877_v32 }
 0x2a3   :  { %657 = vmatpush.msra.mxu3 %v2886_v35 }
 0x2a5   :  { %658 = vmatpush.msra.mxu3 %v2893_v38 }
 0x2a6   :  { %2252 = vmatmul.msk.f32.vlgmr.msrb.gmra.mxu3 %vm191_vm10, %v326_v31 }
 0x2a7   :  { %861 = vmatpush.msrb.mxu3 %v2825_v4 }
 0x2a9   :  { %862 = vmatpush.msrb.mxu3 %v2853_v28 }
 0x2ab   :  { %863 = vmatpush.msrb.mxu3 %v2855_v29 }
 0x2ad   :  { %864 = vmatpush.msrb.mxu3 %v2858_v30 }
 0x321   :  { %v2888_v36 = vpop.f32.mrf.mxu3 }
 0x322   :  { %v369_v37 = vadd.f32 %v366_v33, %v2888_v36 }
 0x324   :  { %v370_v39 = vadd.f32 %v2884_v34, %v369_v37 }
 0x326   :  { %v2250_v40 = vmul.f32 -1.442695, %v370_v39 }
 0x328   :  { %2337 = vpow2.f32 %v2250_v40 }
 0x329   :  { %v448_v41 = vpop.f32.mrf.mxu3 }
 0x32a   :  { %v452_v42 = vrot.slane %v448_v41, 7  ;;  %v456_v43 = vadd.f32 %v448_v41, %v2800_v19 }
 0x32c   :  { %v455_v44 = vadd.f32 %v452_v42, %v2789_v13  ;;  %v458_v45 = vadd.f32 %v2796_v14, %v456_v43 }
 0x32e   :  { %v2338_v46 = vpop.eup %2337  ;;  %v457_v47 = vadd.f32 %v2796_v14, %v455_v44  ;;  %v2254_v48 = vmul.f32 -1.442695, %v458_v45 }
 0x32f   :  { %v374_v49 = vadd.f32 1.0, %v2338_v46 }
 0x330   :  { %v2253_v50 = vmul.f32 -1.442695, %v457_v47  ;;  %2339 = vpow2.f32 %v2254_v48 }
 0x331   :  { %2341 = vrcp.f32 %v374_v49  ;;  %v386_v59 = vand.u32 2147483648, %v374_v49  ;;  %v384_v61 = vand.u32 2147483647, %v374_v49  ;;  %vm380_vm12 = vweird.f32 %v374_v49 }
 0x332   :  { %2343 = vpow2.f32 %v2253_v50 }
 0x333   :  { %v387_v16 = vor.u32 1.1754944e-38, %v386_v59  ;;  %vm385_vm14 = vcmp.eq.f32.partialorder %v384_v61, 8.507059e+37 }
 0x336   :  { %v2340_v51 = vpop.eup %2339 }
 0x337   :  { %v2342_v52 = vpop.eup %2341  ;;  %v466_v53 = vadd.f32 1.0, %v2340_v51 }
 0x338   :  { %v2344_v54 = vpop.eup %2343  ;;  %v376_v55 = vmul.f32 %v2342_v52, %v374_v49  ;;  %vm381_vm11 = vweird.f32 %v2342_v52  ;;  %v499_v49 = vpop.permute.xlu0 %498 }
 0x339   :  { %v465_v57 = vadd.f32 1.0, %v2344_v54  ;;  %2345 = vrcp.f32 %v466_v53  ;;  %vm382_vm13 = vmor %vm380_vm12, %vm381_vm11  ;;  %vm487_vm0 = vweird.f32 %v466_v53  ;;  %v491_v39 = vand.u32 2147483647, %v466_v53 }
 0x33a   :  { %v377_v58 = vsub.f32 1.0, %v376_v55  ;;  %v493_v40 = vand.u32 2147483648, %v466_v53 }
 0x33b   :  { %2347 = vrcp.f32 %v465_v57  ;;  %v478_v37 = vand.u32 2147483648, %v465_v57  ;;  %v476_v42 = vand.u32 2147483647, %v465_v57  ;;  %vm472_vm3 = vweird.f32 %v465_v57 }
 0x33c   :  { %v378_v60 = vmul.f32 %v2342_v52, %v377_v58  ;;  %v494_v47 = vor.u32 1.1754944e-38, %v493_v40  ;;  %vm492_vm6 = vcmp.eq.f32.partialorder %v491_v39, 8.507059e+37 }
 0x33d   :  { %v479_v46 = vor.u32 1.1754944e-38, %v478_v37  ;;  %vm477_vm5 = vcmp.eq.f32.partialorder %v476_v42, 8.507059e+37 }
 0x33e   :  { %v379_v62 = vadd.f32 %v2342_v52, %v378_v60 }
 0x33f   :  { %v2346_v63 = vpop.eup %2345 }
 0x340   :  { %v483_v17 = vmul.f32 %v2346_v63, %v466_v53  ;;  %v383_v18 = vsel %vm382_vm13, %v2342_v52, %v379_v62  ;;  %vm488_vm15 = vweird.f32 %v2346_v63  ;;  %v501_v53 = vpop.permute.xlu1 %500 }
 0x341   :  { %v2348_v22 = vpop.eup %2347  ;;  %v2910_v23 = vsel %vm385_vm14, %v387_v16, %v383_v18  ;;  %vm489_vm2 = vmor %vm487_vm0, %vm488_vm15 }
 0x342   :  { %v468_v24 = vmul.f32 %v2348_v22, %v465_v57  ;;  %v484_v25 = vsub.f32 1.0, %v483_v17  ;;  %v2913_v27 = vmul.f32 0.0, %v2910_v23  ;;  %vm473_vm1 = vweird.f32 %v2348_v22  ;;  %v2323_v17 = vld [vmem:[%s3525_s10] ss:$0 sm:$0xff]  ;;  %s2232_s10 = sshll.u32 %s3528_s13, 4  ;;  %s2233_s10 = int_to_ptr.hbm [resolvable:$true] %s2232_s10 }
 0x343   :  { %vm474_vm4 = vmor %vm472_vm3, %vm473_vm1 }
 0x344   :  { %2251 = vmatmul.msk.f32.vlgmr.msrb.gmra.mxu2 %vm191_vm10, %v2913_v27  ;;  %v469_v31 = vsub.f32 1.0, %v468_v24  ;;  %v485_v33 = vmul.f32 %v2346_v63, %v484_v25 }
 0x345   :  { %836 = vmatpush.msrb.mxu2 %v2820_v0 }
 0x346   :  { %v470_v41 = vmul.f32 %v2348_v22, %v469_v31  ;;  %v486_v43 = vadd.f32 %v2346_v63, %v485_v33 }
 0x347   :  { %837 = vmatpush.msrb.mxu2 %v2822_v2 }
 0x348   :  { %v471_v44 = vadd.f32 %v2348_v22, %v470_v41  ;;  %v490_v45 = vsel %vm489_vm2, %v2346_v63, %v486_v43 }
 0x349   :  { %838 = vmatpush.msrb.mxu2 %v2827_v8  ;;  %v495_v51 = vsel %vm492_vm6, %v494_v47, %v490_v45 }
 0x34a   :  { %v475_v48 = vsel %vm474_vm4, %v2348_v22, %v471_v44  ;;  %v505_v54 = vmul.f32 %v501_v53, %v495_v51  ;;  %v551_v33 = vsub.f32 1.0, %v495_v51  ;;  %v549_v43 = vmul.f32 %v495_v51, %v2845_v26 }
 0x34b   :  { %v480_v50 = vsel %vm477_vm5, %v479_v46, %v475_v48  ;;  %839 = vmatpush.msrb.mxu2 %v2831_v15  ;;  %v424_v51 = vsub.f32 1.0, %v2910_v23 }
 0x34c   :  { %v504_v52 = vmul.f32 %v499_v49, %v480_v50  ;;  %v550_v37 = vsub.f32 1.0, %v480_v50  ;;  %v548_v41 = vmul.f32 %v497_v21, %v480_v50 }
 0x34e   :  { %v508_v55 = vrot.slane %v504_v52, 1 }
 0x350   :  { %v509_v57 = vsel %vm266_vm9, %v505_v54, %v508_v55 }
 0x351   :  { %2255 = vmatmul.msk.f32.vlgmr.msrb.gmra.mxu0 %vm191_vm10, %v509_v57 }
 0x352   :  { %907 = vmatpush.msrb.mxu0 %v2873_v7 }
 0x354   :  { %908 = vmatpush.msrb.mxu0 %v2877_v32 }
 0x356   :  { %909 = vmatpush.msrb.mxu0 %v2886_v35 }
 0x358   :  { %910 = vmatpush.msrb.mxu0 %v2893_v38 }
 0x3c7   :  { %v411_v60 = vpop.f32.mrf.mxu2 }
 0x3ce   :  { %v529_v58 = vpop.f32.mrf.mxu0 }
 0x3cf   :  { %v533_v59 = vrot.slane %v529_v58, 7  ;;  %536 = vrot.lane.b32.xlu0 %v529_v58, %s2652_s7 }
 0x3d1   :  { %534 = vrot.lane.b32.xlu2 %v533_v59, %s2652_s7 }
 0x3d7   :  { %415 = vrot.lane.b32.xlu0 %v411_v60, %s2652_s7 }
 0x42b   :  { %v535_v61 = vpop.permute.xlu2 %534 }
 0x42c   :  { %v540_v62 = vadd.f32 %v535_v61, %v2789_v13 }
 0x42e   :  { %v542_v63 = vadd.f32 %v540_v62, %v2812_v56 }
 0x430   :  { %2349 = vtanh.f32 %v542_v63 }
 0x436   :  { %v2350_v16 = vpop.eup %2349 }
 0x437   :  { %554 = vrot.lane.b32.xlu1 %v2350_v16, %s2653_s5 }
 0x43f   :  { %419 = vrot.lane.b32.xlu1 %v2323_v17, %s2652_s7 }
 0x441   :  { %v537_v18 = vpop.permute.xlu0 %536 }
 0x442   :  { %v541_v22 = vadd.f32 %v537_v18, %v2800_v19 }
 0x444   :  { %v543_v24 = vadd.f32 %v541_v22, %v2812_v56 }
 0x446   :  { %2351 = vtanh.f32 %v543_v24 }
 0x449   :  { %v416_v45 = vpop.permute.xlu0 %415 }
 0x44a   :  { %v418_v48 = vadd.f32 %v416_v45, %v2888_v36 }
 0x44c   :  { %v2352_v25 = vpop.eup %2351 }
 0x44d   :  { %556 = vrot.lane.b32.xlu2 %v2352_v25, %s2653_s5 }
 0x4a7   :  { %v557_v31 = vpop.permute.xlu2 %556 }
 0x4a8   :  { %v561_v40 = vmul.f32 %v557_v31, %v551_v33 }
 0x4a9   :  { %v555_v39 = vpop.permute.xlu1 %554 }
 0x4aa   :  { %v560_v42 = vmul.f32 %v555_v39, %v550_v37  ;;  %v2945_v46 = vadd.f32 %v561_v40, %v549_v43 }
 0x4ac   :  { %v2943_v44 = vadd.f32 %v560_v42, %v548_v41  ;;  %v746_v36 = vrot.slane %v2945_v46, 7 }
 0x4ae   :  { %v566_v47 = vrot.slane %v2943_v44, 1  ;;  %v745_v21 = vrot.slane %v2943_v44, 7 }
 0x4b0   :  { %v567_v49 = vsel %vm266_vm9, %v2945_v46, %v566_v47 }
 0x4b1   :  { %v2951_v52 = vpop.permute.xlu1 %419  ;;  %568 = vrot.lane.b32.xlu2 %v567_v49, %s2653_s5 }
 0x4b2   :  { %v422_v20 = vadd.f32 %v2951_v52, %v418_v48 }
 0x4b4   :  { %2353 = vtanh.f32 %v422_v20 }
 0x4b9   :  { %747 = vrot.lane.b32.xlu2 %v745_v21, %s2653_s5 }
 0x4ba   :  { %v2354_v26 = vpop.eup %2353 }
 0x4bb   :  { %426 = vrot.lane.b32.xlu0 %v2354_v26, %s2653_s5 }
 0x4c3   :  { %749 = vrot.lane.b32.xlu0 %v746_v36, %s2653_s5 }
 0x50b   :  { %v569_v50 = vpop.permute.xlu2 %568 }
 0x50c   :  { %2256 = vmatmul.msk.f32.vlgmr.msra.gmra.mxu1 %vm191_vm10, %v569_v50  ;;  %2260 = vmatmul.msk.f32.vlgmr.msra.gmra.mxu0 %vm191_vm10, %v569_v50 }
 0x50d   :  { %942 = vmatpush.msra.mxu1 %v2743_v1  ;;  %1113 = vmatpush.msra.mxu0 %v2825_v4 }
 0x50f   :  { %943 = vmatpush.msra.mxu1 %v2749_v3  ;;  %1114 = vmatpush.msra.mxu0 %v2853_v28 }
 0x511   :  { %944 = vmatpush.msra.mxu1 %v2757_v5  ;;  %1115 = vmatpush.msra.mxu0 %v2855_v29 }
 0x513   :  { %945 = vmatpush.msra.mxu1 %v2763_v6  ;;  %1116 = vmatpush.msra.mxu0 %v2858_v30 }
 0x52d   :  { %v427_v53 = vpop.permute.xlu0 %426 }
 0x52e   :  { %v429_v54 = vmul.f32 %v427_v53, %v424_v51  ;;  %v748_v53 = vpop.permute.xlu2 %747 }
 0x530   :  { %v2976_v55 = vadd.f32 %v429_v54, %v2913_v27 }
 0x532   :  { %593 = vrot.lane.b32.xlu1 %v2976_v55, %s2653_s5 }
 0x589   :  { %v695_v57 = vpop.f32.mrf.mxu0 }
 0x58a   :  { %v699_v58 = vrot.slane %v695_v57, 6  ;;  %v700_v59 = vrot.slane %v695_v57, 7 }
 0x58c   :  { %v703_v60 = vadd.f32 %v699_v58, %v2789_v13  ;;  %v704_v61 = vadd.f32 %v700_v59, %v2800_v19  ;;  %v750_v58 = vpop.permute.xlu0 %749 }
 0x58e   :  { %v705_v62 = vadd.f32 %v2796_v14, %v703_v60  ;;  %v706_v63 = vadd.f32 %v2796_v14, %v704_v61 }
 0x590   :  { %v2261_v23 = vmul.f32 -1.442695, %v705_v62  ;;  %v2262_v16 = vmul.f32 -1.442695, %v706_v63 }
 0x592   :  { %2355 = vpow2.f32 %v2261_v23 }
 0x593   :  { %2357 = vpow2.f32 %v2262_v16  ;;  %v3004_v16 = vpop.f32.mrf.mxu1 }
 0x598   :  { %v2356_v27 = vpop.eup %2355 }
 0x599   :  { %v2358_v17 = vpop.eup %2357  ;;  %v713_v18 = vadd.f32 1.0, %v2356_v27 }
 0x59a   :  { %v714_v22 = vadd.f32 1.0, %v2358_v17 }
 0x59b   :  { %2359 = vrcp.f32 %v713_v18  ;;  %v726_v41 = vand.u32 2147483648, %v713_v18  ;;  %v724_v43 = vand.u32 2147483647, %v713_v18  ;;  %vm720_vm11 = vweird.f32 %v713_v18 }
 0x59c   :  { %2361 = vrcp.f32 %v714_v22  ;;  %v741_v45 = vand.u32 2147483648, %v714_v22  ;;  %v739_v48 = vand.u32 2147483647, %v714_v22  ;;  %vm735_vm13 = vweird.f32 %v714_v22 }
 0x59d   :  { %v727_v20 = vor.u32 1.1754944e-38, %v726_v41  ;;  %vm725_vm14 = vcmp.eq.f32.partialorder %v724_v43, 8.507059e+37 }
 0x59e   :  { %v742_v51 = vor.u32 1.1754944e-38, %v741_v45  ;;  %vm740_vm0 = vcmp.eq.f32.partialorder %v739_v48, 8.507059e+37 }
 0x5a1   :  { %v2360_v24 = vpop.eup %2359 }
 0x5a2   :  { %v2362_v25 = vpop.eup %2361  ;;  %v716_v31 = vmul.f32 %v2360_v24, %v713_v18  ;;  %vm721_vm7 = vweird.f32 %v2360_v24 }
 0x5a3   :  { %v731_v33 = vmul.f32 %v2362_v25, %v714_v22  ;;  %vm736_vm8 = vweird.f32 %v2362_v25  ;;  %vm722_vm12 = vmor %vm720_vm11, %vm721_vm7 }
 0x5a4   :  { %v717_v37 = vsub.f32 1.0, %v716_v31  ;;  %v2984_v39 = vpop.permute.xlu1 %593  ;;  %vm737_vm15 = vmor %vm735_vm13, %vm736_vm8 }
 0x5a5   :  { %v732_v40 = vsub.f32 1.0, %v731_v33  ;;  %2257 = vmatmul.msk.f32.vlgmr.msra.gmra.mxu2 %vm191_vm10, %v2984_v39 }
 0x5a6   :  { %v718_v42 = vmul.f32 %v2360_v24, %v717_v37  ;;  %1026 = vmatpush.msra.mxu2 %v2771_v9 }
 0x5a7   :  { %v733_v47 = vmul.f32 %v2362_v25, %v732_v40 }
 0x5a8   :  { %v719_v49 = vadd.f32 %v2360_v24, %v718_v42  ;;  %1027 = vmatpush.msra.mxu2 %v2773_v10 }
 0x5a9   :  { %v734_v26 = vadd.f32 %v2362_v25, %v733_v47 }
 0x5aa   :  { %v723_v50 = vsel %vm722_vm12, %v2360_v24, %v719_v49  ;;  %1028 = vmatpush.msra.mxu2 %v2777_v11 }
 0x5ab   :  { %v2991_v54 = vsel %vm725_vm14, %v727_v20, %v723_v50  ;;  %v738_v57 = vsel %vm737_vm15, %v2362_v25, %v734_v26 }
 0x5ac   :  { %v2993_v59 = vsel %vm740_vm0, %v742_v51, %v738_v57  ;;  %v753_v60 = vmul.f32 %v748_v53, %v2991_v54  ;;  %1029 = vmatpush.msra.mxu2 %v2781_v12 }
 0x5ad   :  { %v754_v61 = vmul.f32 %v750_v58, %v2993_v59 }
 0x5ae   :  { %v757_v62 = vrot.slane %v753_v60, 2 }
 0x5af   :  { %v758_v63 = vrot.slane %v754_v61, 1 }
 0x5b1   :  { %v759_v23 = vsel %vm266_vm9, %v758_v63, %v757_v62 }
 0x5b2   :  { %2263 = vmatmul.msk.f32.vlgmr.msrb.gmra.mxu1 %vm191_vm10, %v759_v23 }
 0x5b3   :  { %1159 = vmatpush.msrb.mxu1 %v2873_v7 }
 0x5b5   :  { %1160 = vmatpush.msrb.mxu1 %v2877_v32 }
 0x5b7   :  { %1161 = vmatpush.msrb.mxu1 %v2886_v35 }
 0x5b9   :  { %1162 = vmatpush.msrb.mxu1 %v2893_v38 }
 0x628   :  { %v614_v27 = vpop.f32.mrf.mxu2 }
 0x629   :  { %v617_v17 = vadd.f32 %v614_v27, %v3004_v16  ;;  %v802_v27 = vsub.f32 1.0, %v2993_v59 }
 0x62b   :  { %v618_v18 = vadd.f32 %v2884_v34, %v617_v17 }
 0x62d   :  { %v2258_v22 = vmul.f32 -1.442695, %v618_v18  ;;  %v800_v18 = vmul.f32 %v746_v36, %v2993_v59 }
 0x62f   :  { %2363 = vpow2.f32 %v2258_v22  ;;  %v779_v24 = vpop.f32.mrf.mxu1  ;;  %v801_v22 = vsub.f32 1.0, %v2991_v54 }
 0x630   :  { %v783_v25 = vrot.slane %v779_v24, 6  ;;  %v784_v31 = vrot.slane %v779_v24, 7 }
 0x632   :  { %787 = vrot.lane.b32.xlu2 %v784_v31, %s2652_s7  ;;  %785 = vrot.lane.b32.xlu1 %v783_v25, %s2652_s7  ;;  %v799_v31 = vmul.f32 %v745_v21, %v2991_v54 }
 0x635   :  { %v2364_v33 = vpop.eup %2363 }
 0x636   :  { %v622_v37 = vadd.f32 1.0, %v2364_v33 }
 0x638   :  { %2365 = vrcp.f32 %v622_v37  ;;  %v634_v43 = vand.u32 2147483648, %v622_v37  ;;  %v632_v47 = vand.u32 2147483647, %v622_v37  ;;  %vm628_vm2 = vweird.f32 %v622_v37 }
 0x63a   :  { %v635_v49 = vor.u32 1.1754944e-38, %v634_v43  ;;  %vm633_vm4 = vcmp.eq.f32.partialorder %v632_v47, 8.507059e+37 }
 0x63e   :  { %v2366_v40 = vpop.eup %2365 }
 0x63f   :  { %v624_v41 = vmul.f32 %v2366_v40, %v622_v37  ;;  %vm629_vm1 = vweird.f32 %v2366_v40 }
 0x640   :  { %vm630_vm3 = vmor %vm628_vm2, %vm629_vm1 }
 0x641   :  { %v625_v42 = vsub.f32 1.0, %v624_v41 }
 0x643   :  { %v626_v45 = vmul.f32 %v2366_v40, %v625_v42 }
 0x645   :  { %v627_v48 = vadd.f32 %v2366_v40, %v626_v45 }
 0x647   :  { %v631_v20 = vsel %vm630_vm3, %v2366_v40, %v627_v48 }
 0x648   :  { %v636_v26 = vsel %vm633_vm4, %v635_v49, %v631_v20 }
 0x649   :  { %v639_v50 = vmul.f32 %v636_v26, %v2984_v39  ;;  %v671_v43 = vsub.f32 1.0, %v636_v26  ;;  %v670_v47 = vmul.f32 %v636_v26, %v2976_v55 }
 0x64b   :  { %2259 = vmatmul.msk.f32.vlgmr.msra.gmra.mxu3 %vm191_vm10, %v639_v50 }
 0x64c   :  { %1088 = vmatpush.msra.mxu3 %v2820_v0 }
 0x64e   :  { %1089 = vmatpush.msra.mxu3 %v2822_v2 }
 0x650   :  { %1090 = vmatpush.msra.mxu3 %v2827_v8 }
 0x652   :  { %1091 = vmatpush.msra.mxu3 %v2831_v15 }
 0x68c   :  { %v788_v51 = vpop.permute.xlu2 %787 }
 0x68d   :  { %v792_v53 = vadd.f32 %v788_v51, %v2800_v19 }
 0x68f   :  { %v794_v57 = vadd.f32 %v792_v53, %v2812_v56 }
 0x691   :  { %2367 = vtanh.f32 %v794_v57 }
 0x697   :  { %v2368_v58 = vpop.eup %2367 }
 0x698   :  { %807 = vrot.lane.b32.xlu1 %v2368_v58, %s2653_s5 }
 0x6a4   :  { %v786_v39 = vpop.permute.xlu1 %785 }
 0x6a5   :  { %v791_v60 = vadd.f32 %v786_v39, %v2789_v13 }
 0x6a7   :  { %v793_v61 = vadd.f32 %v791_v60, %v2812_v56 }
 0x6a9   :  { %2369 = vtanh.f32 %v793_v61 }
 0x6af   :  { %v2370_v62 = vpop.eup %2369 }
 0x6b0   :  { %805 = vrot.lane.b32.xlu0 %v2370_v62, %s2653_s5 }
 0x6ce   :  { %v660_v63 = vpop.f32.mrf.mxu3 }
 0x6cf   :  { %664 = vrot.lane.b32.xlu2 %v660_v63, %s2652_s7 }
 0x70a   :  { %v808_v23 = vpop.permute.xlu1 %807 }
 0x70b   :  { %v812_v17 = vmul.f32 %v808_v23, %v802_v27 }
 0x70d   :  { %v3028_v25 = vadd.f32 %v812_v17, %v800_v18 }
 0x70f   :  { %v818_v40 = vrot.slane %v3028_v25, 1  ;;  %v998_v54 = vrot.slane %v3028_v25, 7 }
 0x722   :  { %v806_v24 = vpop.permute.xlu0 %805 }
 0x723   :  { %v811_v33 = vmul.f32 %v806_v24, %v801_v22 }
 0x725   :  { %v3033_v37 = vadd.f32 %v811_v33, %v799_v31 }
 0x727   :  { %v817_v41 = vrot.slane %v3033_v37, 2  ;;  %v997_v44 = vrot.slane %v3033_v37, 7 }
 0x729   :  { %v665_v42 = vpop.permute.xlu2 %664  ;;  %v819_v46 = vsel %vm266_vm9, %v818_v40, %v817_v41 }
 0x72a   :  { %v667_v36 = vadd.f32 %v665_v42, %v3004_v16  ;;  %820 = vrot.lane.b32.xlu0 %v819_v46, %s2653_s5 }
 0x72c   :  { %v668_v59 = vadd.f32 %v667_v36, %v2951_v52 }
 0x72e   :  { %2371 = vtanh.f32 %v668_v59 }
 0x732   :  { %999 = vrot.lane.b32.xlu0 %v997_v44, %s2653_s5 }
 0x734   :  { %v2372_v21 = vpop.eup %2371 }
 0x735   :  { %673 = vrot.lane.b32.xlu1 %v2372_v21, %s2653_s5 }
 0x73d   :  { %1001 = vrot.lane.b32.xlu1 %v998_v54, %s2653_s5 }
 0x79c   :  { %v821_v16 = vpop.permute.xlu0 %820 }
 0x79d   :  { %2264 = vmatmul.msk.f32.vlgmr.msrb.gmra.mxu2 %vm191_vm10, %v821_v16  ;;  %2268 = vmatmul.msk.f32.vlgmr.msra.gmra.mxu1 %vm191_vm10, %v821_v16 }
 0x79e   :  { %1194 = vmatpush.msrb.mxu2 %v2743_v1  ;;  %1365 = vmatpush.msra.mxu1 %v2825_v4 }
 0x7a0   :  { %1195 = vmatpush.msrb.mxu2 %v2749_v3  ;;  %1366 = vmatpush.msra.mxu1 %v2853_v28 }
 0x7a2   :  { %1196 = vmatpush.msrb.mxu2 %v2757_v5  ;;  %1367 = vmatpush.msra.mxu1 %v2855_v29 }
 0x7a4   :  { %1197 = vmatpush.msrb.mxu2 %v2763_v6  ;;  %1368 = vmatpush.msra.mxu1 %v2858_v30  ;;  %v1000_v41 = vpop.permute.xlu0 %999 }
 0x7a7   :  { %v674_v45 = vpop.permute.xlu1 %673 }
 0x7a8   :  { %v676_v48 = vmul.f32 %v674_v45, %v671_v43 }
 0x7aa   :  { %v3061_v1 = vadd.f32 %v676_v48, %v670_v47 }
 0x7ac   :  { %845 = vrot.lane.b32.xlu2 %v3061_v1, %s2653_s5 }
 0x7af   :  { %v1002_v36 = vpop.permute.xlu1 %1001 }
 0x806   :  { %v3065_v3 = vpop.permute.xlu2 %845 }
 0x807   :  { %2265 = vmatmul.msk.f32.vlgmr.msrb.gmra.mxu3 %vm191_vm10, %v3065_v3 }
 0x808   :  { %1278 = vmatpush.msrb.mxu3 %v2771_v9 }
 0x80a   :  { %1279 = vmatpush.msrb.mxu3 %v2773_v10 }
 0x80c   :  { %1280 = vmatpush.msrb.mxu3 %v2777_v11 }
 0x80e   :  { %1281 = vmatpush.msrb.mxu3 %v2781_v12 }
 0x81a   :  { %v947_v5 = vpop.f32.mrf.mxu1 }
 0x81b   :  { %v951_v6 = vrot.slane %v947_v5, 5  ;;  %v952_v55 = vrot.slane %v947_v5, 6 }
 0x81d   :  { %v955_v49 = vadd.f32 %v951_v6, %v2789_v13  ;;  %v956_v20 = vadd.f32 %v952_v55, %v2800_v19 }
 0x81f   :  { %v957_v26 = vadd.f32 %v2796_v14, %v955_v49  ;;  %v958_v50 = vadd.f32 %v2796_v14, %v956_v20 }
 0x820   :  { %v841_v48 = vpop.f32.mrf.mxu2 }
 0x821   :  { %v2269_v51 = vmul.f32 -1.442695, %v957_v26  ;;  %v2270_v53 = vmul.f32 -1.442695, %v958_v50 }
 0x823   :  { %2373 = vpow2.f32 %v2269_v51 }
 0x824   :  { %2375 = vpow2.f32 %v2270_v53 }
 0x829   :  { %v2374_v9 = vpop.eup %2373 }
 0x82a   :  { %v2376_v10 = vpop.eup %2375  ;;  %v965_v11 = vadd.f32 1.0, %v2374_v9 }
 0x82b   :  { %v966_v57 = vadd.f32 1.0, %v2376_v10 }
 0x82c   :  { %2377 = vrcp.f32 %v965_v11  ;;  %v978_v63 = vand.u32 2147483648, %v965_v11  ;;  %v976_v14 = vand.u32 2147483647, %v965_v11  ;;  %vm972_vm7 = vweird.f32 %v965_v11 }
 0x82d   :  { %2379 = vrcp.f32 %v966_v57  ;;  %v993_v27 = vand.u32 2147483648, %v966_v57  ;;  %v991_v18 = vand.u32 2147483647, %v966_v57  ;;  %vm987_vm11 = vweird.f32 %v966_v57 }
 0x82e   :  { %v979_v24 = vor.u32 1.1754944e-38, %v978_v63  ;;  %vm977_vm12 = vcmp.eq.f32.partialorder %v976_v14, 8.507059e+37 }
 0x82f   :  { %v994_v40 = vor.u32 1.1754944e-38, %v993_v27  ;;  %vm992_vm14 = vcmp.eq.f32.partialorder %v991_v18, 8.507059e+37 }
 0x832   :  { %v2378_v12 = vpop.eup %2377 }
 0x833   :  { %v2380_v58 = vpop.eup %2379  ;;  %v968_v39 = vmul.f32 %v2378_v12, %v965_v11  ;;  %vm973_vm5 = vweird.f32 %v2378_v12 }
 0x834   :  { %v983_v60 = vmul.f32 %v2380_v58, %v966_v57  ;;  %vm988_vm6 = vweird.f32 %v2380_v58  ;;  %vm974_vm8 = vmor %vm972_vm7, %vm973_vm5 }
 0x835   :  { %v969_v61 = vsub.f32 1.0, %v968_v39  ;;  %vm989_vm13 = vmor %vm987_vm11, %vm988_vm6 }
 0x836   :  { %v984_v62 = vsub.f32 1.0, %v983_v60 }
 0x837   :  { %v970_v23 = vmul.f32 %v2378_v12, %v969_v61 }
 0x838   :  { %v985_v17 = vmul.f32 %v2380_v58, %v984_v62 }
 0x839   :  { %v971_v22 = vadd.f32 %v2378_v12, %v970_v23 }
 0x83a   :  { %v986_v31 = vadd.f32 %v2380_v58, %v985_v17 }
 0x83b   :  { %v975_v33 = vsel %vm974_vm8, %v2378_v12, %v971_v22 }
 0x83c   :  { %v3077_v42 = vsel %vm977_vm12, %v979_v24, %v975_v33  ;;  %v990_v46 = vsel %vm989_vm13, %v2380_v58, %v986_v31 }
 0x83d   :  { %v3079_v59 = vsel %vm992_vm14, %v994_v40, %v990_v46  ;;  %v1005_v21 = vmul.f32 %v1000_v41, %v3077_v42  ;;  %v1053_v18 = vsub.f32 1.0, %v3077_v42  ;;  %v1051_v24 = vmul.f32 %v997_v44, %v3077_v42 }
 0x83e   :  { %v1006_v16 = vmul.f32 %v1002_v36, %v3079_v59  ;;  %v1054_v31 = vsub.f32 1.0, %v3079_v59  ;;  %v1052_v41 = vmul.f32 %v998_v54, %v3079_v59 }
 0x83f   :  { %v1009_v43 = vrot.slane %v1005_v21, 3 }
 0x840   :  { %v1010_v45 = vrot.slane %v1006_v16, 2 }
 0x842   :  { %v1011_v47 = vsel %vm266_vm9, %v1010_v45, %v1009_v43 }
 0x843   :  { %2271 = vmatmul.msk.f32.vlgmr.msra.gmra.mxu2 %vm191_vm10, %v1011_v47 }
 0x844   :  { %1411 = vmatpush.msra.mxu2 %v2873_v7 }
 0x846   :  { %1412 = vmatpush.msra.mxu2 %v2877_v32 }
 0x848   :  { %1413 = vmatpush.msra.mxu2 %v2886_v35 }
 0x84a   :  { %1414 = vmatpush.msra.mxu2 %v2893_v38 }
 0x88a   :  { %v866_v5 = vpop.f32.mrf.mxu3 }
 0x88b   :  { %v869_v6 = vadd.f32 %v866_v5, %v841_v48  ;;  %v3155_v5 = vld [vmem:[%s3517_s2 + $0x8] sm:$0xff] }
 0x88d   :  { %v870_v55 = vadd.f32 %v2884_v34, %v869_v6 }
 0x88f   :  { %v2266_v49 = vmul.f32 -1.442695, %v870_v55  ;;  %v3173_v55 = vld [vmem:[#allocation5 + $0x10] sm:$0xff] }
 0x891   :  { %2381 = vpow2.f32 %v2266_v49  ;;  %v3179_v49 = vld [vmem:[#allocation5] sm:$0xff] }
 0x897   :  { %v2382_v20 = vpop.eup %2381 }
 0x898   :  { %v874_v26 = vadd.f32 1.0, %v2382_v20 }
 0x89a   :  { %2383 = vrcp.f32 %v874_v26  ;;  %v886_v7 = vand.u32 2147483648, %v874_v26  ;;  %v884_v32 = vand.u32 2147483647, %v874_v26  ;;  %vm880_vm0 = vweird.f32 %v874_v26 }
 0x89c   :  { %v887_v38 = vor.u32 1.1754944e-38, %v886_v7  ;;  %vm885_vm2 = vcmp.eq.f32.partialorder %v884_v32, 8.507059e+37 }
 0x8a0   :  { %v2384_v50 = vpop.eup %2383 }
 0x8a1   :  { %v876_v51 = vmul.f32 %v2384_v50, %v874_v26  ;;  %vm881_vm15 = vweird.f32 %v2384_v50 }
 0x8a2   :  { %vm882_vm1 = vmor %vm880_vm0, %vm881_vm15 }
 0x8a3   :  { %v877_v53 = vsub.f32 1.0, %v876_v51 }
 0x8a5   :  { %v878_v9 = vmul.f32 %v2384_v50, %v877_v53  ;;  %v3187_v53 = vld [vmem:[%s3519_s4] ss:$0 sm:$0xff] }
 0x8a7   :  { %v879_v35 = vadd.f32 %v2384_v50, %v878_v9 }
 0x8a9   :  { %v883_v10 = vsel %vm882_vm1, %v2384_v50, %v879_v35 }
 0x8aa   :  { %v888_v11 = vsel %vm885_vm2, %v887_v38, %v883_v10 }
 0x8ab   :  { %v891_v34 = vmul.f32 %v888_v11, %v3065_v3  ;;  %v923_v44 = vsub.f32 1.0, %v888_v11  ;;  %v922_v42 = vmul.f32 %v888_v11, %v3061_v1  ;;  %v3148_v1 = vld [vmem:[%s3517_s2 + $0x10] sm:$0xff] }
 0x8ad   :  { %2267 = vmatmul.msk.f32.vlgmr.msrb.gmra.mxu0 %vm191_vm10, %v891_v34 }
 0x8ae   :  { %1340 = vmatpush.msrb.mxu0 %v2820_v0 }
 0x8b0   :  { %1341 = vmatpush.msrb.mxu0 %v2822_v2 }
 0x8b2   :  { %1342 = vmatpush.msrb.mxu0 %v2827_v8 }
 0x8b4   :  { %1343 = vmatpush.msrb.mxu0 %v2831_v15 }
 0x8c6   :  { %v1031_v57 = vpop.f32.mrf.mxu2 }
 0x8c7   :  { %v1035_v12 = vrot.slane %v1031_v57, 5  ;;  %v1036_v58 = vrot.slane %v1031_v57, 6 }
 0x8c9   :  { %1039 = vrot.lane.b32.xlu0 %v1036_v58, %s2652_s7  ;;  %1037 = vrot.lane.b32.xlu2 %v1035_v12, %s2652_s7 }
 0x923   :  { %v1038_v39 = vpop.permute.xlu2 %1037 }
 0x924   :  { %v1043_v3 = vadd.f32 %v1038_v39, %v2789_v13 }
 0x926   :  { %v1045_v60 = vadd.f32 %v1043_v3, %v2812_v56 }
 0x928   :  { %2385 = vtanh.f32 %v1045_v60 }
 0x92a   :  { %v912_v0 = vpop.f32.mrf.mxu0 }
 0x92b   :  { %916 = vrot.lane.b32.xlu1 %v912_v0, %s2652_s7 }
 0x92e   :  { %v2386_v2 = vpop.eup %2385 }
 0x92f   :  { %1057 = vrot.lane.b32.xlu2 %v2386_v2, %s2653_s5 }
 0x93b   :  { %v1040_v8 = vpop.permute.xlu0 %1039 }
 0x93c   :  { %v1044_v15 = vadd.f32 %v1040_v8, %v2800_v19 }
 0x93e   :  { %v1046_v61 = vadd.f32 %v1044_v15, %v2812_v56 }
 0x940   :  { %2387 = vtanh.f32 %v1046_v61 }
 0x946   :  { %v2388_v62 = vpop.eup %2387 }
 0x947   :  { %1059 = vrot.lane.b32.xlu0 %v2388_v62, %s2653_s5 }
 0x989   :  { %v1058_v17 = vpop.permute.xlu2 %1057 }
 0x98a   :  { %v1063_v22 = vmul.f32 %v1058_v17, %v1053_v18 }
 0x98c   :  { %v3112_v40 = vadd.f32 %v1063_v22, %v1051_v24 }
 0x98e   :  { %v1069_v21 = vrot.slane %v3112_v40, 3  ;;  %v1249_v25 = vrot.slane %v3112_v40, 7 }
 0x99d   :  { %v917_v63 = vpop.permute.xlu1 %916 }
 0x99e   :  { %v919_v23 = vadd.f32 %v917_v63, %v841_v48  ;;  %v3141_v48 = vld [vmem:[%s3517_s2 + $0x18] sm:$0xff] }
 0x9a0   :  { %v920_v14 = vadd.f32 %v919_v23, %v2951_v52 }
 0x9a2   :  { %2389 = vtanh.f32 %v920_v14 }
 0x9a8   :  { %v2390_v27 = vpop.eup %2389 }
 0x9a9   :  { %925 = vrot.lane.b32.xlu2 %v2390_v27, %s2653_s5 }
 0x9b9   :  { %v1060_v33 = vpop.permute.xlu0 %1059 }
 0x9ba   :  { %v1064_v46 = vmul.f32 %v1060_v33, %v1054_v31 }
 0x9bc   :  { %v3117_v36 = vadd.f32 %v1064_v46, %v1052_v41 }
 0x9be   :  { %v1070_v16 = vrot.slane %v3117_v36, 2  ;;  %v1250_v43 = vrot.slane %v3117_v36, 7 }
 0x9c0   :  { %1253 = vrot.lane.b32.xlu2 %v1250_v43, %s2653_s5  ;;  %v1071_v37 = vsel %vm266_vm9, %v1070_v16, %v1069_v21 }
 0x9c1   :  { %1072 = vrot.lane.b32.xlu1 %v1071_v37, %s2653_s5 }
 0x9c9   :  { %1251 = vrot.lane.b32.xlu1 %v1249_v25, %s2653_s5 }
 0xa03   :  { %v926_v54 = vpop.permute.xlu2 %925 }
 0xa04   :  { %v928_v59 = vmul.f32 %v926_v54, %v923_v44  ;;  %v3199_v44 = vld [vmem:[#allocation10 + $0x18] sm:$0xff]  ;;  %v3202_v54 = vld [vmem:[#allocation10 + $0x10] sm:$0xff] }
 0xa06   :  { %v3132_v45 = vadd.f32 %v928_v59, %v922_v42  ;;  %v3205_v42 = vld [vmem:[#allocation10 + $0x8] sm:$0xff]  ;;  %v3208_v59 = vld [vmem:[#allocation10] sm:$0xff] }
 0xa08   :  { %1097 = vrot.lane.b32.xlu0 %v3132_v45, %s2653_s5 }
 0xa1a   :  { %v1254_v31 = vpop.permute.xlu2 %1253 }
 0xa33   :  { %v1073_v47 = vpop.permute.xlu1 %1072 }
 0xa34   :  { %2272 = vmatmul.msk.f32.vlgmr.msra.gmra.mxu3 %vm191_vm10, %v1073_v47  ;;  %2276 = vmatmul.msk.f32.vlgmr.msrb.gmra.mxu2 %vm191_vm10, %v1073_v47 }
 0xa35   :  { %1446 = vmatpush.msra.mxu3 %v3141_v48  ;;  %1617 = vmatpush.msrb.mxu2 %v2825_v4  ;;  %v3162_v4 = vld [vmem:[%s3517_s2] sm:$0xff] }
 0xa37   :  { %1447 = vmatpush.msra.mxu3 %v3148_v1  ;;  %1618 = vmatpush.msrb.mxu2 %v2853_v28  ;;  %v3170_v28 = vld [vmem:[#allocation5 + $0x18] sm:$0xff] }
 0xa39   :  { %1448 = vmatpush.msra.mxu3 %v3155_v5  ;;  %1619 = vmatpush.msrb.mxu2 %v2855_v29  ;;  %v3176_v29 = vld [vmem:[#allocation5 + $0x8] sm:$0xff] }
 0xa3b   :  { %1449 = vmatpush.msra.mxu3 %v3162_v4  ;;  %1620 = vmatpush.msrb.mxu2 %v2858_v30  ;;  %v1252_v18 = vpop.permute.xlu1 %1251 }
 0xa7a   :  { %v3166_v6 = vpop.permute.xlu0 %1097 }
 0xa7b   :  { %2273 = vmatmul.msk.f32.vlgmr.msra.gmra.mxu0 %vm191_vm10, %v3166_v6 }
 0xa7c   :  { %1530 = vmatpush.msra.mxu0 %v3170_v28 }
 0xa7e   :  { %1531 = vmatpush.msra.mxu0 %v3173_v55 }
 0xa80   :  { %1532 = vmatpush.msra.mxu0 %v3176_v29 }
 0xa82   :  { %1533 = vmatpush.msra.mxu0 %v3179_v49 }
 0xab7   :  { %v1199_v30 = vpop.f32.mrf.mxu2  ;;  %v1093_v47 = vpop.f32.mrf.mxu3 }
 0xab8   :  { %v1203_v20 = vrot.slane %v1199_v30, 4  ;;  %v1204_v26 = vrot.slane %v1199_v30, 5 }
 0xaba   :  { %v1207_v50 = vadd.f32 %v1203_v20, %v2789_v13  ;;  %v1208_v51 = vadd.f32 %v1204_v26, %v2800_v19  ;;  %v3214_v26 = vld [vmem:[%s3524_s9] ss:$0 sm:$0xff] }
 0xabc   :  { %v1209_v7 = vadd.f32 %v3187_v53, %v1207_v50  ;;  %v1210_v9 = vadd.f32 %v3187_v53, %v1208_v51 }
 0xabe   :  { %v2277_v32 = vmul.f32 -1.442695, %v1209_v7  ;;  %v2278_v35 = vmul.f32 -1.442695, %v1210_v9 }
 0xac0   :  { %2391 = vpow2.f32 %v2277_v32 }
 0xac1   :  { %2393 = vpow2.f32 %v2278_v35 }
 0xac6   :  { %v2392_v38 = vpop.eup %2391 }
 0xac7   :  { %v2394_v10 = vpop.eup %2393  ;;  %v1217_v11 = vadd.f32 1.0, %v2392_v38 }
 0xac8   :  { %v1218_v34 = vadd.f32 1.0, %v2394_v10 }
 0xac9   :  { %2395 = vrcp.f32 %v1217_v11  ;;  %v1230_v0 = vand.u32 2147483648, %v1217_v11  ;;  %v1228_v8 = vand.u32 2147483647, %v1217_v11  ;;  %vm1224_vm5 = vweird.f32 %v1217_v11 }
 0xaca   :  { %2397 = vrcp.f32 %v1218_v34  ;;  %v1245_v15 = vand.u32 2147483648, %v1218_v34  ;;  %v1243_v62 = vand.u32 2147483647, %v1218_v34  ;;  %vm1239_vm7 = vweird.f32 %v1218_v34 }
 0xacb   :  { %v1231_v23 = vor.u32 1.1754944e-38, %v1230_v0  ;;  %vm1229_vm8 = vcmp.eq.f32.partialorder %v1228_v8, 8.507059e+37  ;;  %v3222_v0 = vld [vmem:[#allocation7 + $0x10] sm:$0xff]  ;;  %v3228_v8 = vld [vmem:[#allocation7] sm:$0xff] }
 0xacc   :  { %v1246_v17 = vor.u32 1.1754944e-38, %v1245_v15  ;;  %vm1244_vm12 = vcmp.eq.f32.partialorder %v1243_v62, 8.507059e+37 }
 0xacf   :  { %v2396_v57 = vpop.eup %2395 }
 0xad0   :  { %v2398_v12 = vpop.eup %2397  ;;  %v1220_v58 = vmul.f32 %v2396_v57, %v1217_v11  ;;  %vm1225_vm3 = vweird.f32 %v2396_v57 }
 0xad1   :  { %v1235_v39 = vmul.f32 %v2398_v12, %v1218_v34  ;;  %vm1240_vm4 = vweird.f32 %v2398_v12  ;;  %vm1226_vm6 = vmor %vm1224_vm5, %vm1225_vm3 }
 0xad2   :  { %v1221_v3 = vsub.f32 1.0, %v1220_v58  ;;  %vm1241_vm11 = vmor %vm1239_vm7, %vm1240_vm4 }
 0xad3   :  { %v1236_v60 = vsub.f32 1.0, %v1235_v39 }
 0xad4   :  { %v1222_v2 = vmul.f32 %v2396_v57, %v1221_v3 }
 0xad5   :  { %v1237_v61 = vmul.f32 %v2398_v12, %v1236_v60  ;;  %v3219_v60 = vld [vmem:[#allocation7 + $0x18] sm:$0xff] }
 0xad6   :  { %v1223_v63 = vadd.f32 %v2396_v57, %v1222_v2  ;;  %v3225_v2 = vld [vmem:[#allocation7 + $0x8] sm:$0xff] }
 0xad7   :  { %v1238_v14 = vadd.f32 %v2398_v12, %v1237_v61 }
 0xad8   :  { %v1227_v27 = vsel %vm1226_vm6, %v2396_v57, %v1223_v63 }
 0xad9   :  { %v3191_v22 = vsel %vm1229_vm8, %v1231_v23, %v1227_v27  ;;  %v1242_v24 = vsel %vm1241_vm11, %v2398_v12, %v1238_v14 }
 0xada   :  { %v3193_v33 = vsel %vm1244_vm12, %v1246_v17, %v1242_v24  ;;  %v1257_v41 = vmul.f32 %v1252_v18, %v3191_v22 }
 0xadb   :  { %v1258_v46 = vmul.f32 %v1254_v31, %v3193_v33 }
 0xadc   :  { %v1261_v21 = vrot.slane %v1257_v41, 4 }
 0xadd   :  { %v1262_v16 = vrot.slane %v1258_v46, 3 }
 0xadf   :  { %v1263_v37 = vsel %vm266_vm9, %v1262_v16, %v1261_v21 }
 0xae0   :  { %2279 = vmatmul.msk.f32.vlgmr.msrb.gmra.mxu3 %vm191_vm10, %v1263_v37  ;;  %v1306_v37 = vsub.f32 1.0, %v3193_v33 }
 0xae1   :  { %1663 = vmatpush.msrb.mxu3 %v3199_v44 }
 0xae3   :  { %1664 = vmatpush.msrb.mxu3 %v3202_v54 }
 0xae5   :  { %1665 = vmatpush.msrb.mxu3 %v3205_v42 }
 0xae7   :  { %1666 = vmatpush.msrb.mxu3 %v3208_v59 }
 0xaf8   :  { %v1118_v30 = vpop.f32.mrf.mxu0 }
 0xaf9   :  { %v1121_v20 = vadd.f32 %v1118_v30, %v1093_v47 }
 0xafb   :  { %v1122_v50 = vadd.f32 %v3214_v26, %v1121_v20  ;;  %v1305_v20 = vsub.f32 1.0, %v3191_v22 }
 0xafd   :  { %v2274_v51 = vmul.f32 -1.442695, %v1122_v50  ;;  %v1304_v50 = vmul.f32 %v1250_v43, %v3193_v33 }
 0xaff   :  { %2399 = vpow2.f32 %v2274_v51 }
 0xb05   :  { %v2400_v7 = vpop.eup %2399 }
 0xb06   :  { %v1126_v9 = vadd.f32 1.0, %v2400_v7 }
 0xb08   :  { %2401 = vrcp.f32 %v1126_v9  ;;  %v1138_v10 = vand.u32 2147483648, %v1126_v9  ;;  %v1136_v34 = vand.u32 2147483647, %v1126_v9  ;;  %vm1132_vm14 = vweird.f32 %v1126_v9 }
 0xb0a   :  { %v1139_v12 = vor.u32 1.1754944e-38, %v1138_v10  ;;  %vm1137_vm0 = vcmp.eq.f32.partialorder %v1136_v34, 8.507059e+37 }
 0xb0e   :  { %v2402_v32 = vpop.eup %2401 }
 0xb0f   :  { %v1128_v35 = vmul.f32 %v2402_v32, %v1126_v9  ;;  %vm1133_vm13 = vweird.f32 %v2402_v32 }
 0xb10   :  { %vm1134_vm15 = vmor %vm1132_vm14, %vm1133_vm13 }
 0xb11   :  { %v1129_v38 = vsub.f32 1.0, %v1128_v35 }
 0xb13   :  { %v1130_v11 = vmul.f32 %v2402_v32, %v1129_v38 }
 0xb15   :  { %v1131_v57 = vadd.f32 %v2402_v32, %v1130_v11 }
 0xb17   :  { %v1135_v58 = vsel %vm1134_vm15, %v2402_v32, %v1131_v57 }
 0xb18   :  { %v1140_v39 = vsel %vm1137_vm0, %v1139_v12, %v1135_v58  ;;  %v3279_v12 = vld [vmem:[#allocation8 + $0x18] sm:$0xff]  ;;  %v3284_v58 = vld [vmem:[#allocation8 + $0x10] sm:$0xff] }
 0xb19   :  { %v1143_v3 = vmul.f32 %v1140_v39, %v3166_v6  ;;  %v1175_v32 = vsub.f32 1.0, %v1140_v39  ;;  %v1174_v11 = vmul.f32 %v1140_v39, %v3132_v45  ;;  %v3289_v39 = vld [vmem:[#allocation8 + $0x8] sm:$0xff] }
 0xb1b   :  { %2275 = vmatmul.msk.f32.vlgmr.msrb.gmra.mxu1 %vm191_vm10, %v1143_v3  ;;  %v3294_v3 = vld [vmem:[#allocation8] sm:$0xff] }
 0xb1c   :  { %1592 = vmatpush.msrb.mxu1 %v3219_v60 }
 0xb1e   :  { %1593 = vmatpush.msrb.mxu1 %v3222_v0 }
 0xb20   :  { %1594 = vmatpush.msrb.mxu1 %v3225_v2 }
 0xb22   :  { %1595 = vmatpush.msrb.mxu1 %v3228_v8 }
 0xb63   :  { %v1283_v15 = vpop.f32.mrf.mxu3 }
 0xb64   :  { %v1287_v6 = vrot.slane %v1283_v15, 4  ;;  %v1288_v61 = vrot.slane %v1283_v15, 5 }
 0xb66   :  { %1291 = vrot.lane.b32.xlu1 %v1288_v61, %s2652_s7  ;;  %1289 = vrot.lane.b32.xlu0 %v1287_v6, %s2652_s7 }
 0xb98   :  { %v1164_v62 = vpop.f32.mrf.mxu1 }
 0xb99   :  { %1168 = vrot.lane.b32.xlu2 %v1164_v62, %s2652_s7 }
 0xbd8   :  { %v1292_v63 = vpop.permute.xlu1 %1291  ;;  %v1290_v23 = vpop.permute.xlu0 %1289 }
 0xbd9   :  { %v1296_v14 = vadd.f32 %v1292_v63, %v2800_v19  ;;  %v1295_v27 = vadd.f32 %v1290_v23, %v2789_v13 }
 0xbdb   :  { %v1298_v17 = vadd.f32 %v1296_v14, %v2812_v56  ;;  %v1297_v18 = vadd.f32 %v1295_v27, %v2812_v56 }
 0xbdd   :  { %2403 = vtanh.f32 %v1298_v17 }
 0xbde   :  { %2405 = vtanh.f32 %v1297_v18 }
 0xbe3   :  { %v2404_v24 = vpop.eup %2403 }
 0xbe4   :  { %v2406_v31 = vpop.eup %2405  ;;  %1311 = vrot.lane.b32.xlu1 %v2404_v24, %s2653_s5 }
 0xbe5   :  { %1309 = vrot.lane.b32.xlu0 %v2406_v31, %s2653_s5 }
 0xbf3   :  { %v1169_v41 = vpop.permute.xlu2 %1168 }
 0xbf4   :  { %v1171_v46 = vadd.f32 %v1169_v41, %v1093_v47  ;;  %v1303_v47 = vmul.f32 %v1249_v25, %v3191_v22 }
 0xbf6   :  { %v1172_v21 = vadd.f32 %v1171_v46, %v2951_v52 }
 0xbf8   :  { %2407 = vtanh.f32 %v1172_v21 }
 0xbfe   :  { %v2408_v16 = vpop.eup %2407 }
 0xbff   :  { %1177 = vrot.lane.b32.xlu2 %v2408_v16, %s2653_s5 }
 0xc56   :  { %v1312_v30 = vpop.permute.xlu1 %1311 }
 0xc57   :  { %v1316_v51 = vmul.f32 %v1312_v30, %v1306_v37  ;;  %v1310_v7 = vpop.permute.xlu0 %1309 }
 0xc58   :  { %v1315_v9 = vmul.f32 %v1310_v7, %v1305_v20 }
 0xc59   :  { %v3250_v35 = vadd.f32 %v1316_v51, %v1304_v50  ;;  %v1178_v38 = vpop.permute.xlu2 %1177 }
 0xc5a   :  { %v3252_v10 = vadd.f32 %v1315_v9, %v1303_v47  ;;  %v1180_v34 = vmul.f32 %v1178_v38, %v1175_v32 }
 0xc5b   :  { %v1322_v57 = vrot.slane %v3250_v35, 3  ;;  %v1502_v25 = vrot.slane %v3250_v35, 7 }
 0xc5c   :  { %v1321_v36 = vrot.slane %v3252_v10, 4  ;;  %v3257_v43 = vadd.f32 %v1180_v34, %v1174_v11  ;;  %v1501_v33 = vrot.slane %v3252_v10, 7 }
 0xc5e   :  { %1503 = vrot.lane.b32.xlu2 %v1501_v33, %s2653_s5  ;;  %v1323_v40 = vsel %vm266_vm9, %v1322_v57, %v1321_v36  ;;  %1349 = vrot.lane.b32.xlu1 %v3257_v43, %s2653_s5 }
 0xc5f   :  { %1324 = vrot.lane.b32.xlu0 %v1323_v40, %s2653_s5 }
 0xc67   :  { %1505 = vrot.lane.b32.xlu0 %v1502_v25, %s2653_s5 }
 0xcd0   :  { %v3271_v45 = vpop.permute.xlu1 %1349 }
 0xcd1   :  { %v1325_v22 = vpop.permute.xlu0 %1324  ;;  %2281 = vmatmul.msk.f32.vlgmr.msra.gmra.mxu1 %vm191_vm10, %v3271_v45 }
 0xcd2   :  { %2280 = vmatmul.msk.f32.vlgmr.msrb.gmra.mxu0 %vm191_vm10, %v1325_v22  ;;  %2284 = vmatmul.msk.f32.vlgmr.msra.gmra.mxu3 %vm191_vm10, %v1325_v22 }
 0xcd3   :  { %1698 = vmatpush.msrb.mxu0 %v3141_v48  ;;  %1782 = vmatpush.msra.mxu1 %v3170_v28 }
 0xcd4   :  { %1869 = vmatpush.msra.mxu3 %v3279_v12 }
 0xcd5   :  { %1699 = vmatpush.msrb.mxu0 %v3148_v1  ;;  %1783 = vmatpush.msra.mxu1 %v3173_v55 }
 0xcd6   :  { %1870 = vmatpush.msra.mxu3 %v3284_v58 }
 0xcd7   :  { %1700 = vmatpush.msrb.mxu0 %v3155_v5  ;;  %1784 = vmatpush.msra.mxu1 %v3176_v29 }
 0xcd8   :  { %1871 = vmatpush.msra.mxu3 %v3289_v39 }
 0xcd9   :  { %1701 = vmatpush.msrb.mxu0 %v3162_v4  ;;  %1785 = vmatpush.msra.mxu1 %v3179_v49 }
 0xcda   :  { %1872 = vmatpush.msra.mxu3 %v3294_v3 }
 0xd4e   :  { %v1370_v15 = vpop.f32.mrf.mxu1 }
 0xd4f   :  { %v3297_v6 = vpop.f32.mrf.mxu0 }
 0xd50   :  { %v1373_v61 = vadd.f32 %v1370_v15, %v3297_v6 }
 0xd52   :  { %v1374_v62 = vadd.f32 %v3214_v26, %v1373_v61 }
 0xd54   :  { %v2282_v63 = vmul.f32 -1.442695, %v1374_v62 }
 0xd55   :  { %v1451_v23 = vpop.f32.mrf.mxu3 }
 0xd56   :  { %2409 = vpow2.f32 %v2282_v63  ;;  %v1455_v14 = vrot.slane %v1451_v23, 3  ;;  %v1456_v27 = vrot.slane %v1451_v23, 4 }
 0xd58   :  { %v1459_v17 = vadd.f32 %v1455_v14, %v2789_v13  ;;  %v1460_v18 = vadd.f32 %v1456_v27, %v2800_v19 }
 0xd5a   :  { %v1461_v24 = vadd.f32 %v3187_v53, %v1459_v17  ;;  %v1462_v31 = vadd.f32 %v3187_v53, %v1460_v18 }
 0xd5c   :  { %v2410_v41 = vpop.eup %2409  ;;  %v2285_v46 = vmul.f32 -1.442695, %v1461_v24  ;;  %v2286_v21 = vmul.f32 -1.442695, %v1462_v31 }
 0xd5d   :  { %v1378_v16 = vadd.f32 1.0, %v2410_v41 }
 0xd5e   :  { %2411 = vpow2.f32 %v2285_v46 }
 0xd5f   :  { %2413 = vrcp.f32 %v1378_v16  ;;  %v1390_v9 = vand.u32 2147483648, %v1378_v16  ;;  %v1388_v38 = vand.u32 2147483647, %v1378_v16  ;;  %vm1384_vm2 = vweird.f32 %v1378_v16 }
 0xd60   :  { %2415 = vpow2.f32 %v2286_v21 }
 0xd61   :  { %v1391_v57 = vor.u32 1.1754944e-38, %v1390_v9  ;;  %vm1389_vm4 = vcmp.eq.f32.partialorder %v1388_v38, 8.507059e+37 }
 0xd64   :  { %v2412_v37 = vpop.eup %2411 }
 0xd65   :  { %v2414_v30 = vpop.eup %2413  ;;  %v1469_v20 = vadd.f32 1.0, %v2412_v37 }
 0xd66   :  { %v2416_v50 = vpop.eup %2415  ;;  %v1380_v51 = vmul.f32 %v2414_v30, %v1378_v16  ;;  %vm1385_vm1 = vweird.f32 %v2414_v30  ;;  %v1504_v16 = vpop.permute.xlu2 %1503 }
 0xd67   :  { %v1470_v7 = vadd.f32 1.0, %v2416_v50  ;;  %2417 = vrcp.f32 %v1469_v20  ;;  %vm1386_vm3 = vmor %vm1384_vm2, %vm1385_vm1  ;;  %v1482_v23 = vand.u32 2147483648, %v1469_v20  ;;  %v1480_v17 = vand.u32 2147483647, %v1469_v20 }
 0xd68   :  { %v1381_v47 = vsub.f32 1.0, %v1380_v51  ;;  %vm1476_vm6 = vweird.f32 %v1469_v20  ;;  %v1506_v51 = vpop.permute.xlu0 %1505 }
 0xd69   :  { %2419 = vrcp.f32 %v1470_v7  ;;  %v1497_v18 = vand.u32 2147483648, %v1470_v7  ;;  %v1495_v41 = vand.u32 2147483647, %v1470_v7  ;;  %v1483_v46 = vor.u32 1.1754944e-38, %v1482_v23 }
 0xd6a   :  { %v1382_v32 = vmul.f32 %v2414_v30, %v1381_v47  ;;  %vm1481_vm11 = vcmp.eq.f32.partialorder %v1480_v17, 8.507059e+37  ;;  %vm1491_vm12 = vweird.f32 %v1470_v7 }
 0xd6b   :  { %vm1496_vm14 = vcmp.eq.f32.partialorder %v1495_v41, 8.507059e+37 }
 0xd6c   :  { %v1383_v11 = vadd.f32 %v2414_v30, %v1382_v32 }
 0xd6d   :  { %v2418_v34 = vpop.eup %2417 }
 0xd6e   :  { %v1472_v36 = vmul.f32 %v2418_v34, %v1469_v20  ;;  %v1387_v40 = vsel %vm1386_vm3, %v2414_v30, %v1383_v11  ;;  %vm1477_vm5 = vweird.f32 %v2418_v34  ;;  %v1498_v30 = vor.u32 1.1754944e-38, %v1497_v18 }
 0xd6f   :  { %v2420_v22 = vpop.eup %2419  ;;  %v3305_v15 = vsel %vm1389_vm4, %v1391_v57, %v1387_v40  ;;  %vm1478_vm8 = vmor %vm1476_vm6, %vm1477_vm5 }
 0xd70   :  { %v1473_v61 = vsub.f32 1.0, %v1472_v36  ;;  %v1487_v62 = vmul.f32 %v2420_v22, %v1470_v7  ;;  %v1395_v63 = vmul.f32 %v3305_v15, %v3271_v45  ;;  %vm1492_vm7 = vweird.f32 %v2420_v22 }
 0xd71   :  { %vm1493_vm13 = vmor %vm1491_vm12, %vm1492_vm7  ;;  %v1427_v41 = vsub.f32 1.0, %v3305_v15 }
 0xd72   :  { %v1488_v14 = vsub.f32 1.0, %v1487_v62  ;;  %2283 = vmatmul.msk.f32.vlgmr.msra.gmra.mxu2 %vm191_vm10, %v1395_v63  ;;  %v1474_v27 = vmul.f32 %v2418_v34, %v1473_v61 }
 0xd73   :  { %1844 = vmatpush.msra.mxu2 %v3219_v60 }
 0xd74   :  { %v1475_v24 = vadd.f32 %v2418_v34, %v1474_v27  ;;  %v1489_v31 = vmul.f32 %v2420_v22, %v1488_v14 }
 0xd75   :  { %1845 = vmatpush.msra.mxu2 %v3222_v0 }
 0xd76   :  { %v1479_v45 = vsel %vm1478_vm8, %v2418_v34, %v1475_v24  ;;  %v1490_v21 = vadd.f32 %v2420_v22, %v1489_v31 }
 0xd77   :  { %v1484_v37 = vsel %vm1481_vm11, %v1483_v46, %v1479_v45  ;;  %1846 = vmatpush.msra.mxu2 %v3225_v2 }
 0xd78   :  { %v1494_v20 = vsel %vm1493_vm13, %v2420_v22, %v1490_v21  ;;  %v1509_v50 = vmul.f32 %v1504_v16, %v1484_v37 }
 0xd79   :  { %v1499_v47 = vsel %vm1496_vm14, %v1498_v30, %v1494_v20  ;;  %1847 = vmatpush.msra.mxu2 %v3228_v8 }
 0xd7a   :  { %v1510_v9 = vmul.f32 %v1506_v51, %v1499_v47  ;;  %v1513_v32 = vrot.slane %v1509_v50, 5  ;;  %v1558_v30 = vsub.f32 1.0, %v1499_v47  ;;  %v1556_v50 = vmul.f32 %v1502_v25, %v1499_v47 }
 0xd7b   :  { %v1557_v51 = vsub.f32 1.0, %v1484_v37 }
 0xd7c   :  { %v1514_v38 = vrot.slane %v1510_v9, 4 }
 0xd7e   :  { %v1515_v11 = vsel %vm266_vm9, %v1514_v38, %v1513_v32  ;;  %v1555_v38 = vmul.f32 %v1501_v33, %v1484_v37 }
 0xd7f   :  { %2287 = vmatmul.msk.f32.vlgmr.msra.gmra.mxu0 %vm191_vm10, %v1515_v11 }
 0xd80   :  { %1915 = vmatpush.msra.mxu0 %v3199_v44 }
 0xd82   :  { %1916 = vmatpush.msra.mxu0 %v3202_v54 }
 0xd84   :  { %1917 = vmatpush.msra.mxu0 %v3205_v42 }
 0xd86   :  { %1918 = vmatpush.msra.mxu0 %v3208_v59 }
 0xdf5   :  { %v1416_v7 = vpop.f32.mrf.mxu2 }
 0xdf6   :  { %1420 = vrot.lane.b32.xlu0 %v1416_v7, %s2652_s7 }
 0xdfc   :  { %v1535_v34 = vpop.f32.mrf.mxu0 }
 0xdfd   :  { %v1539_v57 = vrot.slane %v1535_v34, 3  ;;  %v1540_v36 = vrot.slane %v1535_v34, 4 }
 0xdff   :  { %1543 = vrot.lane.b32.xlu2 %v1540_v36, %s2652_s7  ;;  %1541 = vrot.lane.b32.xlu1 %v1539_v57, %s2652_s7 }
 0xe59   :  { %v1544_v40 = vpop.permute.xlu2 %1543 }
 0xe5a   :  { %v1548_v22 = vadd.f32 %v1544_v40, %v2800_v19 }
 0xe5c   :  { %v1550_v61 = vadd.f32 %v1548_v22, %v2812_v56 }
 0xe5e   :  { %2421 = vtanh.f32 %v1550_v61 }
 0xe64   :  { %v2422_v62 = vpop.eup %2421 }
 0xe65   :  { %1563 = vrot.lane.b32.xlu2 %v2422_v62, %s2653_s5 }
 0xe68   :  { %v1421_v63 = vpop.permute.xlu0 %1420 }
 0xe69   :  { %v1423_v23 = vadd.f32 %v1421_v63, %v3297_v6  ;;  %v1426_v6 = vmul.f32 %v3305_v15, %v3257_v43 }
 0xe6b   :  { %v1424_v14 = vadd.f32 %v1423_v23, %v2951_v52 }
 0xe6d   :  { %2423 = vtanh.f32 %v1424_v14 }
 0xe71   :  { %v1542_v27 = vpop.permute.xlu1 %1541 }
 0xe72   :  { %v1547_v17 = vadd.f32 %v1542_v27, %v2789_v13 }
 0xe73   :  { %v2424_v18 = vpop.eup %2423 }
 0xe74   :  { %v1549_v24 = vadd.f32 %v1547_v17, %v2812_v56  ;;  %1429 = vrot.lane.b32.xlu0 %v2424_v18, %s2653_s5 }
 0xe76   :  { %2425 = vtanh.f32 %v1549_v24 }
 0xe7c   :  { %v2426_v31 = vpop.eup %2425 }
 0xe7d   :  { %1561 = vrot.lane.b32.xlu1 %v2426_v31, %s2653_s5 }
 0xebf   :  { %v1564_v21 = vpop.permute.xlu2 %1563 }
 0xec0   :  { %v1568_v20 = vmul.f32 %v1564_v21, %v1558_v30 }
 0xec2   :  { %v3341_v32 = vadd.f32 %v1568_v20, %v1556_v50 }
 0xec4   :  { %v1574_v11 = vrot.slane %v3341_v32, 4  ;;  %v1754_v10 = vrot.slane %v3341_v32, 7 }
 0xee6   :  { %v1430_v46 = vpop.permute.xlu0 %1429 }
 0xee7   :  { %v1432_v45 = vmul.f32 %v1430_v46, %v1427_v41 }
 0xee9   :  { %v3335_v16 = vadd.f32 %v1432_v45, %v1426_v6 }
 0xeeb   :  { %1601 = vrot.lane.b32.xlu2 %v3335_v16, %s2653_s5 }
 0xeef   :  { %v1562_v9 = vpop.permute.xlu1 %1561 }
 0xef0   :  { %v1567_v43 = vmul.f32 %v1562_v9, %v1557_v51 }
 0xef2   :  { %v3345_v15 = vadd.f32 %v1567_v43, %v1555_v38 }
 0xef4   :  { %v1573_v7 = vrot.slane %v3345_v15, 5  ;;  %v1753_v34 = vrot.slane %v3345_v15, 7 }
 0xef6   :  { %1755 = vrot.lane.b32.xlu0 %v1753_v34, %s2653_s5  ;;  %v1575_v35 = vsel %vm266_vm9, %v1574_v11, %v1573_v7 }
 0xef7   :  { %1576 = vrot.lane.b32.xlu1 %v1575_v35, %s2653_s5 }
 0xeff   :  { %1757 = vrot.lane.b32.xlu1 %v1754_v10, %s2653_s5 }
 0xf45   :  { %v3359_v33 = vpop.permute.xlu2 %1601 }
 0xf46   :  { %2289 = vmatmul.msk.f32.vlgmr.msrb.gmra.mxu2 %vm191_vm10, %v3359_v33 }
 0xf47   :  { %2034 = vmatpush.msrb.mxu2 %v3170_v28 }
 0xf49   :  { %2035 = vmatpush.msrb.mxu2 %v3173_v55 }
 0xf4b   :  { %2036 = vmatpush.msrb.mxu2 %v3176_v29 }
 0xf4d   :  { %2037 = vmatpush.msrb.mxu2 %v3179_v49 }
 0xf69   :  { %v1577_v25 = vpop.permute.xlu1 %1576 }
 0xf6a   :  { %2288 = vmatmul.msk.f32.vlgmr.msrb.gmra.mxu1 %vm191_vm10, %v1577_v25  ;;  %2292 = vmatmul.msk.f32.vlgmr.msrb.gmra.mxu0 %vm191_vm10, %v1577_v25 }
 0xf6b   :  { %1950 = vmatpush.msrb.mxu1 %v3141_v48  ;;  %2121 = vmatpush.msrb.mxu0 %v3279_v12 }
 0xf6d   :  { %1951 = vmatpush.msrb.mxu1 %v3148_v1  ;;  %2122 = vmatpush.msrb.mxu0 %v3284_v58 }
 0xf6f   :  { %1952 = vmatpush.msrb.mxu1 %v3155_v5  ;;  %2123 = vmatpush.msrb.mxu0 %v3289_v39 }
 0xf71   :  { %1953 = vmatpush.msrb.mxu1 %v3162_v4  ;;  %2124 = vmatpush.msrb.mxu0 %v3294_v3 }
 0xfc9   :  { %v1622_v28 = vpop.f32.mrf.mxu2 }
 0xfe7   :  { %v3377_v55 = vpop.f32.mrf.mxu1  ;;  %v1703_v29 = vpop.f32.mrf.mxu0 }
 0xfe8   :  { %v1625_v48 = vadd.f32 %v1622_v28, %v3377_v55  ;;  %v1707_v49 = vrot.slane %v1703_v29, 2  ;;  %v1708_v12 = vrot.slane %v1703_v29, 3 }
 0xfea   :  { %v1626_v1 = vadd.f32 %v3214_v26, %v1625_v48  ;;  %v1711_v58 = vadd.f32 %v1707_v49, %v2789_v13  ;;  %v1712_v5 = vadd.f32 %v1708_v12, %v2800_v19  ;;  %v1756_v12 = vpop.permute.xlu0 %1755 }
 0xfec   :  { %v2290_v37 = vmul.f32 -1.442695, %v1626_v1  ;;  %v1713_v39 = vadd.f32 %v3187_v53, %v1711_v58  ;;  %v1714_v4 = vadd.f32 %v3187_v53, %v1712_v5  ;;  %v1758_v5 = vpop.permute.xlu1 %1757 }
 0xfee   :  { %2427 = vpow2.f32 %v2290_v37  ;;  %v2293_v3 = vmul.f32 -1.442695, %v1713_v39  ;;  %v2294_v47 = vmul.f32 -1.442695, %v1714_v4 }
 0xff0   :  { %2429 = vpow2.f32 %v2293_v3 }
 0xff1   :  { %2431 = vpow2.f32 %v2294_v47 }
 0xff4   :  { %v2428_v57 = vpop.eup %2427 }
 0xff5   :  { %v1630_v36 = vadd.f32 1.0, %v2428_v57 }
 0xff6   :  { %v2430_v40 = vpop.eup %2429 }
 0xff7   :  { %v2432_v22 = vpop.eup %2431  ;;  %2433 = vrcp.f32 %v1630_v36  ;;  %v1721_v61 = vadd.f32 1.0, %v2430_v40  ;;  %v1642_v24 = vand.u32 2147483648, %v1630_v36  ;;  %v1640_v6 = vand.u32 2147483647, %v1630_v36 }
 0xff8   :  { %v1722_v62 = vadd.f32 1.0, %v2432_v22  ;;  %vm1636_vm0 = vweird.f32 %v1630_v36 }
 0xff9   :  { %2435 = vrcp.f32 %v1721_v61  ;;  %v1732_v21 = vand.u32 2147483647, %v1721_v61  ;;  %v1734_v30 = vand.u32 2147483648, %v1721_v61  ;;  %v1643_v9 = vor.u32 1.1754944e-38, %v1642_v24 }
 0xffa   :  { %2437 = vrcp.f32 %v1722_v62  ;;  %v1749_v51 = vand.u32 2147483648, %v1722_v62  ;;  %v1747_v43 = vand.u32 2147483647, %v1722_v62  ;;  %vm1641_vm4 = vcmp.eq.f32.partialorder %v1640_v6, 8.507059e+37 }
 0xffb   :  { %vm1728_vm5 = vweird.f32 %v1721_v61  ;;  %v1735_v25 = vor.u32 1.1754944e-38, %v1734_v30  ;;  %vm1743_vm7 = vweird.f32 %v1722_v62  ;;  %vm1733_vm8 = vcmp.eq.f32.partialorder %v1732_v21, 8.507059e+37 }
 0xffc   :  { %v1750_v49 = vor.u32 1.1754944e-38, %v1749_v51  ;;  %vm1748_vm12 = vcmp.eq.f32.partialorder %v1747_v43, 8.507059e+37 }
 0xffd   :  { %v2434_v63 = vpop.eup %2433 }
 0xffe   :  { %v1632_v23 = vmul.f32 %v2434_v63, %v1630_v36  ;;  %vm1637_vm15 = vweird.f32 %v2434_v63 }
 0xfff   :  { %v2436_v14 = vpop.eup %2435  ;;  %vm1638_vm2 = vmor %vm1636_vm0, %vm1637_vm15 }
0x1000   :  { %v2438_v27 = vpop.eup %2437  ;;  %v1633_v17 = vsub.f32 1.0, %v1632_v23  ;;  %v1724_v18 = vmul.f32 %v2436_v14, %v1721_v61  ;;  %vm1729_vm1 = vweird.f32 %v2436_v14 }
0x1001   :  { %v1739_v31 = vmul.f32 %v2438_v27, %v1722_v62  ;;  %vm1744_vm3 = vweird.f32 %v2438_v27  ;;  %vm1730_vm6 = vmor %vm1728_vm5, %vm1729_vm1 }
0x1002   :  { %v1634_v41 = vmul.f32 %v2434_v63, %v1633_v17  ;;  %v1725_v46 = vsub.f32 1.0, %v1724_v18  ;;  %vm1745_vm11 = vmor %vm1743_vm7, %vm1744_vm3 }
0x1003   :  { %v1740_v45 = vsub.f32 1.0, %v1739_v31 }
0x1004   :  { %v1635_v20 = vadd.f32 %v2434_v63, %v1634_v41  ;;  %v1726_v50 = vmul.f32 %v2436_v14, %v1725_v46 }
0x1005   :  { %v1741_v38 = vmul.f32 %v2438_v27, %v1740_v45 }
0x1006   :  { %v1639_v11 = vsel %vm1638_vm2, %v2434_v63, %v1635_v20  ;;  %v1727_v7 = vadd.f32 %v2436_v14, %v1726_v50 }
0x1007   :  { %v3385_v35 = vsel %vm1641_vm4, %v1643_v9, %v1639_v11  ;;  %v1742_v28 = vadd.f32 %v2438_v27, %v1741_v38 }
0x1008   :  { %v1647_v29 = vmul.f32 %v3385_v35, %v3359_v33  ;;  %v1731_v48 = vsel %vm1730_vm6, %v2436_v14, %v1727_v7  ;;  %v1679_v31 = vsub.f32 1.0, %v3385_v35  ;;  %v1678_v46 = vmul.f32 %v3385_v35, %v3335_v16 }
0x1009   :  { %v1736_v1 = vsel %vm1733_vm8, %v1735_v25, %v1731_v48  ;;  %v1746_v58 = vsel %vm1745_vm11, %v2438_v27, %v1742_v28 }
0x100a   :  { %2291 = vmatmul.msk.f32.vlgmr.msrb.gmra.mxu3 %vm191_vm10, %v1647_v29  ;;  %v1751_v37 = vsel %vm1748_vm12, %v1750_v49, %v1746_v58  ;;  %v1761_v39 = vmul.f32 %v1756_v12, %v1736_v1  ;;  %v1809_v14 = vsub.f32 1.0, %v1736_v1 }
0x100b   :  { %v1762_v4 = vmul.f32 %v1758_v5, %v1751_v37  ;;  %2096 = vmatpush.msrb.mxu3 %v3219_v60  ;;  %v1810_v45 = vsub.f32 1.0, %v1751_v37 }
0x100c   :  { %v1765_v3 = vrot.slane %v1761_v39, 6 }
0x100d   :  { %v1766_v47 = vrot.slane %v1762_v4, 5  ;;  %2097 = vmatpush.msrb.mxu3 %v3222_v0 }
0x100f   :  { %v1767_v33 = vsel %vm266_vm9, %v1766_v47, %v1765_v3  ;;  %2098 = vmatpush.msrb.mxu3 %v3225_v2 }
0x1010   :  { %2295 = vmatmul.msk.f32.vlgmr.msra.gmra.mxu1 %vm191_vm10, %v1767_v33 }
0x1011   :  { %2099 = vmatpush.msrb.mxu3 %v3228_v8  ;;  %2167 = vmatpush.msra.mxu1 %v3199_v44 }
0x1013   :  { %2168 = vmatpush.msra.mxu1 %v3202_v54 }
0x1015   :  { %2169 = vmatpush.msra.mxu1 %v3205_v42 }
0x1017   :  { %2170 = vmatpush.msra.mxu1 %v3208_v59 }
0x108d   :  { %v1787_v60 = vpop.f32.mrf.mxu1  ;;  %v1668_v57 = vpop.f32.mrf.mxu3 }
0x108e   :  { %v1791_v36 = vrot.slane %v1787_v60, 2  ;;  %v1792_v0 = vrot.slane %v1787_v60, 3  ;;  %1672 = vrot.lane.b32.xlu1 %v1668_v57, %s2652_s7 }
0x1090   :  { %1795 = vrot.lane.b32.xlu0 %v1792_v0, %s2652_s7  ;;  %1793 = vrot.lane.b32.xlu2 %v1791_v36, %s2652_s7 }
0x10ea   :  { %v1794_v2 = vpop.permute.xlu2 %1793 }
0x10eb   :  { %v1799_v8 = vadd.f32 %v1794_v2, %v2789_v13 }
0x10ed   :  { %v1801_v44 = vadd.f32 %v1799_v8, %v2812_v56 }
0x10ef   :  { %2439 = vtanh.f32 %v1801_v44 }
0x10f5   :  { %v2440_v54 = vpop.eup %2439 }
0x10f6   :  { %1813 = vrot.lane.b32.xlu2 %v2440_v54, %s2653_s5 }
0x1100   :  { %v1673_v42 = vpop.permute.xlu1 %1672 }
0x1101   :  { %v1675_v59 = vadd.f32 %v1673_v42, %v3377_v55  ;;  %v1807_v55 = vmul.f32 %v1753_v34, %v1736_v1  ;;  %v1808_v34 = vmul.f32 %v1754_v10, %v1751_v37 }
0x1102   :  { %v1796_v40 = vpop.permute.xlu0 %1795 }
0x1103   :  { %v1676_v22 = vadd.f32 %v1675_v59, %v2951_v52  ;;  %v1800_v61 = vadd.f32 %v1796_v40, %v2800_v19 }
0x1105   :  { %2441 = vtanh.f32 %v1676_v22  ;;  %v1802_v62 = vadd.f32 %v1800_v61, %v2812_v56 }
0x1107   :  { %2443 = vtanh.f32 %v1802_v62 }
0x110b   :  { %v2442_v63 = vpop.eup %2441 }
0x110c   :  { %1681 = vrot.lane.b32.xlu1 %v2442_v63, %s2653_s5 }
0x110d   :  { %v2444_v23 = vpop.eup %2443 }
0x110e   :  { %1815 = vrot.lane.b32.xlu0 %v2444_v23, %s2653_s5 }
0x1150   :  { %v1814_v27 = vpop.permute.xlu2 %1813 }
0x1151   :  { %v1819_v17 = vmul.f32 %v1814_v27, %v1809_v14 }
0x1153   :  { %v3414_v18 = vadd.f32 %v1819_v17, %v1807_v55 }
0x1155   :  { %v2005_v24 = vrot.slane %v3414_v18, 7  ;;  %v1825_v50 = vrot.slane %v3414_v18, 6  ;;  %v2491_v18 = vld [vmem:[%s3524_s9] ss:$0 sm:$0xff] }
0x1157   :  { %2007 = vrot.lane.b32.xlu1 %v2005_v24, %s2653_s5 }
0x117e   :  { %v1682_v41 = vpop.permute.xlu1 %1681 }
0x117f   :  { %v1684_v6 = vmul.f32 %v1682_v41, %v1679_v31 }
0x1180   :  { %v1816_v21 = vpop.permute.xlu0 %1815 }
0x1181   :  { %v3423_v15 = vadd.f32 %v1684_v6, %v1678_v46  ;;  %v1820_v30 = vmul.f32 %v1816_v21, %v1810_v45 }
0x1183   :  { %v3427_v20 = vadd.f32 %v1820_v30, %v1808_v34  ;;  %1853 = vrot.lane.b32.xlu0 %v3423_v15, %s2653_s5 }
0x1185   :  { %v1826_v51 = vrot.slane %v3427_v20, 5  ;;  %v2006_v9 = vrot.slane %v3427_v20, 7 }
0x1187   :  { %v1827_v16 = vsel %vm266_vm9, %v1826_v51, %v1825_v50 }
0x1188   :  { %1828 = vrot.lane.b32.xlu2 %v1827_v16, %s2653_s5 }
0x1190   :  { %2009 = vrot.lane.b32.xlu2 %v2006_v9, %s2653_s5 }
0x11c9   :  { %v2008_v62 = vpop.permute.xlu1 %2007 }
0x11e2   :  { %v1829_v32 = vpop.permute.xlu2 %1828 }
0x11e3   :  { %2296 = vmatmul.msk.f32.vlgmr.msra.gmra.mxu2 %vm191_vm10, %v1829_v32  ;;  %2300 = vmatmul.msk.f32.vlgmr.msrb.gmra.mxu1 %vm191_vm10, %v1829_v32 }
0x11ea   :  { %v2010_v14 = vpop.permute.xlu2 %2009 }
0x11f5   :  { %v3441_v10 = vpop.permute.xlu0 %1853 }
0x11f6   :  { %2297 = vmatmul.msk.f32.vlgmr.msra.gmra.mxu3 %vm191_vm10, %v3441_v10 }
0x1260   :  { %v1955_v38 = vpop.f32.mrf.mxu1 }
0x1261   :  { %v1959_v43 = vrot.slane %v1955_v38, 1  ;;  %v1960_v11 = vrot.slane %v1955_v38, 2 }
0x1263   :  { %v1963_v7 = vadd.f32 %v1959_v43, %v2789_v13  ;;  %v1964_v35 = vadd.f32 %v1960_v11, %v2800_v19 }
0x1265   :  { %v1965_v25 = vadd.f32 %v3187_v53, %v1963_v7  ;;  %v1966_v28 = vadd.f32 %v3187_v53, %v1964_v35 }
0x1266   :  { %v3449_v4 = vpop.f32.mrf.mxu2 }
0x1267   :  { %v2301_v29 = vmul.f32 -1.442695, %v1965_v25  ;;  %v2302_v48 = vmul.f32 -1.442695, %v1966_v28 }
0x1269   :  { %2445 = vpow2.f32 %v2301_v29 }
0x126a   :  { %2447 = vpow2.f32 %v2302_v48 }
0x126f   :  { %v2446_v49 = vpop.eup %2445 }
0x1270   :  { %v2448_v12 = vpop.eup %2447  ;;  %v1973_v1 = vadd.f32 1.0, %v2446_v49 }
0x1271   :  { %v1974_v58 = vadd.f32 1.0, %v2448_v12 }
0x1272   :  { %2449 = vrcp.f32 %v1973_v1  ;;  %v1986_v36 = vand.u32 2147483648, %v1973_v1  ;;  %v1984_v2 = vand.u32 2147483647, %v1973_v1  ;;  %vm1980_vm15 = vweird.f32 %v1973_v1 }
0x1273   :  { %2451 = vrcp.f32 %v1974_v58  ;;  %v2001_v8 = vand.u32 2147483648, %v1974_v58  ;;  %v1999_v42 = vand.u32 2147483647, %v1974_v58  ;;  %vm1995_vm1 = vweird.f32 %v1974_v58 }
0x1274   :  { %v1987_v40 = vor.u32 1.1754944e-38, %v1986_v36  ;;  %vm1985_vm2 = vcmp.eq.f32.partialorder %v1984_v2, 8.507059e+37 }
0x1275   :  { %vm2000_vm4 = vcmp.eq.f32.partialorder %v1999_v42, 8.507059e+37 }
0x1278   :  { %v2450_v5 = vpop.eup %2449 }
0x1279   :  { %v2452_v37 = vpop.eup %2451  ;;  %v1976_v39 = vmul.f32 %v2450_v5, %v1973_v1  ;;  %v1874_v3 = vpop.f32.mrf.mxu3  ;;  %vm1981_vm13 = vweird.f32 %v2450_v5 }
0x127a   :  { %v1991_v47 = vmul.f32 %v2452_v37, %v1974_v58  ;;  %v1877_v33 = vadd.f32 %v1874_v3, %v3449_v4  ;;  %vm1996_vm14 = vweird.f32 %v2452_v37  ;;  %vm1982_vm0 = vmor %vm1980_vm15, %vm1981_vm13 }
0x127b   :  { %v1977_v53 = vsub.f32 1.0, %v1976_v39  ;;  %vm1997_vm3 = vmor %vm1995_vm1, %vm1996_vm14  ;;  %vm2223_vm14 = vcmask 140288  }
0x127c   :  { %v1992_v60 = vsub.f32 1.0, %v1991_v47  ;;  %v1878_v57 = vadd.f32 %v3214_v26, %v1877_v33  ;;  %v2002_v26 = vor.u32 1.1754944e-38, %v2001_v8 }
0x127d   :  { %v1978_v0 = vmul.f32 %v2450_v5, %v1977_v53 }
0x127e   :  { %v2298_v44 = vmul.f32 -1.442695, %v1878_v57  ;;  %v1993_v54 = vmul.f32 %v2452_v37, %v1992_v60 }
0x127f   :  { %v1979_v59 = vadd.f32 %v2450_v5, %v1978_v0 }
0x1280   :  { %2453 = vpow2.f32 %v2298_v44  ;;  %v1994_v22 = vadd.f32 %v2452_v37, %v1993_v54 }
0x1281   :  { %v1983_v61 = vsel %vm1982_vm0, %v2450_v5, %v1979_v59 }
0x1282   :  { %v3453_v63 = vsel %vm1985_vm2, %v1987_v40, %v1983_v61  ;;  %v1998_v23 = vsel %vm1997_vm3, %v2452_v37, %v1994_v22 }
0x1283   :  { %v2003_v27 = vsel %vm2000_vm4, %v2002_v26, %v1998_v23  ;;  %v2013_v55 = vmul.f32 %v2008_v62, %v3453_v63  ;;  %v2061_v36 = vsub.f32 1.0, %v3453_v63  ;;  %v2059_v44 = vmul.f32 %v2005_v24, %v3453_v63 }
0x1284   :  { %v2014_v17 = vmul.f32 %v2010_v14, %v2003_v27  ;;  %v2060_v0 = vmul.f32 %v2006_v9, %v2003_v27 }
0x1285   :  { %v2017_v31 = vrot.slane %v2013_v55, 7 }
0x1286   :  { %v2454_v41 = vpop.eup %2453  ;;  %v2018_v46 = vrot.slane %v2014_v17, 6 }
0x1287   :  { %v1882_v6 = vadd.f32 1.0, %v2454_v41 }
0x1288   :  { %v2019_v45 = vsel %vm266_vm9, %v2018_v46, %v2017_v31 }
0x1289   :  { %2455 = vrcp.f32 %v1882_v6  ;;  %2303 = vmatmul.msk.f32.vlgmr.msrb.gmra.mxu2 %vm191_vm10, %v2019_v45  ;;  %v1894_v50 = vand.u32 2147483648, %v1882_v6  ;;  %v1892_v16 = vand.u32 2147483647, %v1882_v6  ;;  %vm1888_vm6 = vweird.f32 %v1882_v6 }
0x128b   :  { %v1895_v38 = vor.u32 1.1754944e-38, %v1894_v50  ;;  %vm1893_vm8 = vcmp.eq.f32.partialorder %v1892_v16, 8.507059e+37 }
0x128f   :  { %v2456_v21 = vpop.eup %2455 }
0x1290   :  { %v1884_v34 = vmul.f32 %v2456_v21, %v1882_v6  ;;  %vm1889_vm5 = vweird.f32 %v2456_v21 }
0x1291   :  { %vm1890_vm7 = vmor %vm1888_vm6, %vm1889_vm5 }
0x1292   :  { %v1885_v30 = vsub.f32 1.0, %v1884_v34 }
0x1294   :  { %v1886_v51 = vmul.f32 %v2456_v21, %v1885_v30 }
0x1296   :  { %v1887_v32 = vadd.f32 %v2456_v21, %v1886_v51 }
0x1298   :  { %v1891_v43 = vsel %vm1890_vm7, %v2456_v21, %v1887_v32 }
0x1299   :  { %v1896_v11 = vsel %vm1893_vm8, %v1895_v38, %v1891_v43  ;;  %v2193_v43 = vld [vmem:[%s3526_s11 + $0x18] sm:$0xff] }
0x129a   :  { %v1899_v7 = vmul.f32 %v1896_v11, %v3441_v10  ;;  %v1931_v33 = vsub.f32 1.0, %v1896_v11  ;;  %v1930_v60 = vmul.f32 %v1896_v11, %v3423_v15  ;;  %v2192_v11 = vld [vmem:[%s3526_s11 + $0x10] sm:$0xff]  ;;  %2215 = vmatpush.msra.mxu2 %v2193_v43 }
0x129c   :  { %2299 = vmatmul.msk.f32.vlgmr.msra.gmra.mxu0 %vm191_vm10, %v1899_v7  ;;  %v2191_v7 = vld [vmem:[%s3526_s11 + $0x8] sm:$0xff]  ;;  %2216 = vmatpush.msra.mxu2 %v2192_v11 }
0x129e   :  { %2217 = vmatpush.msra.mxu2 %v2191_v7 }
0x130c   :  { %v2039_v35 = vpop.f32.mrf.mxu2 }
0x130d   :  { %v2043_v25 = vrot.slane %v2039_v35, 1  ;;  %v2044_v28 = vrot.slane %v2039_v35, 2 }
0x130f   :  { %2047 = vrot.lane.b32.xlu1 %v2044_v28, %s2652_s7  ;;  %2045 = vrot.lane.b32.xlu0 %v2043_v25, %s2652_s7 }
0x1319   :  { %v1920_v29 = vpop.f32.mrf.mxu0 }
0x131a   :  { %1924 = vrot.lane.b32.xlu2 %v1920_v29, %s2652_s7 }
0x1374   :  { %v1925_v48 = vpop.permute.xlu2 %1924 }
0x1375   :  { %v1927_v49 = vadd.f32 %v1925_v48, %v3449_v4 }
0x1377   :  { %v1928_v12 = vadd.f32 %v1927_v49, %v2951_v52 }
0x1379   :  { %2457 = vtanh.f32 %v1928_v12  ;;  %v2324_v12 = vld [vmem:[%s3527_s12] ss:$0 sm:$0xff] }
0x137f   :  { %v2458_v1 = vpop.eup %2457 }
0x1380   :  { %1933 = vrot.lane.b32.xlu2 %v2458_v1, %s2653_s5 }
0x1381   :  { %v2048_v10 = vpop.permute.xlu1 %2047  ;;  %v2046_v58 = vpop.permute.xlu0 %2045 }
0x1382   :  { %v2052_v5 = vadd.f32 %v2048_v10, %v2800_v19  ;;  %v2051_v37 = vadd.f32 %v2046_v58, %v2789_v13  ;;  %v2062_v13 = vsub.f32 1.0, %v2003_v27 }
0x1384   :  { %v2054_v39 = vadd.f32 %v2052_v5, %v2812_v56  ;;  %v2053_v3 = vadd.f32 %v2051_v37, %v2812_v56 }
0x1386   :  { %2459 = vtanh.f32 %v2054_v39 }
0x1387   :  { %2461 = vtanh.f32 %v2053_v3 }
0x138c   :  { %v2460_v47 = vpop.eup %2459 }
0x138d   :  { %v2462_v4 = vpop.eup %2461  ;;  %2067 = vrot.lane.b32.xlu1 %v2460_v47, %s2653_s5 }
0x138e   :  { %2065 = vrot.lane.b32.xlu0 %v2462_v4, %s2653_s5 }
0x13da   :  { %v1934_v53 = vpop.permute.xlu2 %1933 }
0x13db   :  { %v1936_v57 = vmul.f32 %v1934_v53, %v1931_v33 }
0x13dd   :  { %v3473_v19 = vadd.f32 %v1936_v57, %v1930_v60 }
0x13df   :  { %2105 = vrot.lane.b32.xlu1 %v3473_v19, %s2653_s5 }
0x13ff   :  { %v2068_v56 = vpop.permute.xlu1 %2067 }
0x1400   :  { %v2072_v2 = vmul.f32 %v2068_v56, %v2062_v13  ;;  %v2066_v8 = vpop.permute.xlu0 %2065 }
0x1401   :  { %v2071_v15 = vmul.f32 %v2066_v8, %v2061_v36 }
0x1402   :  { %v2074_v54 = vadd.f32 %v2072_v2, %v2060_v0 }
0x1403   :  { %v2073_v42 = vadd.f32 %v2071_v15, %v2059_v44 }
0x1404   :  { %v2078_v59 = vrot.slane %v2074_v54, 6 }
0x1405   :  { %v2077_v40 = vrot.slane %v2073_v42, 7 }
0x1407   :  { %v2079_v22 = vsel %vm266_vm9, %v2078_v59, %v2077_v40 }
0x1408   :  { %2080 = vrot.lane.b32.xlu0 %v2079_v22, %s2653_s5 }
0x1451   :  { %v2106_v61 = vpop.permute.xlu1 %2105 }
0x1452   :  { %2305 = vmatmul.msk.f32.vlgmr.msrb.gmra.mxu0 %vm191_vm10, %v2106_v61 }
0x147a   :  { %v2081_v20 = vpop.permute.xlu0 %2080 }
0x147b   :  { %2304 = vmatmul.msk.f32.vlgmr.msrb.gmra.mxu3 %vm191_vm10, %v2081_v20 }
0x14cf   :  { %v2126_v9 = vpop.f32.mrf.mxu0 }
0x14fe   :  { %v2101_v26 = vpop.f32.mrf.mxu3 }
0x14ff   :  { %v2129_v62 = vadd.f32 %v2126_v9, %v2101_v26 }
0x1501   :  { %v2130_v24 = vadd.f32 %v2491_v18, %v2129_v62 }
0x1503   :  { %v2306_v63 = vmul.f32 -1.442695, %v2130_v24 }
0x1505   :  { %2463 = vpow2.f32 %v2306_v63 }
0x150b   :  { %v2464_v23 = vpop.eup %2463 }
0x150c   :  { %v2134_v14 = vadd.f32 1.0, %v2464_v23 }
0x150e   :  { %2465 = vrcp.f32 %v2134_v14  ;;  %v2146_v31 = vand.u32 2147483648, %v2134_v14  ;;  %v2144_v46 = vand.u32 2147483647, %v2134_v14  ;;  %vm2140_vm11 = vweird.f32 %v2134_v14 }
0x1510   :  { %v2147_v45 = vor.u32 1.1754944e-38, %v2146_v31  ;;  %vm2145_vm13 = vcmp.eq.f32.partialorder %v2144_v46, 8.507059e+37 }
0x1514   :  { %v2466_v27 = vpop.eup %2465 }
0x1515   :  { %v2136_v55 = vmul.f32 %v2466_v27, %v2134_v14  ;;  %vm2141_vm9 = vweird.f32 %v2466_v27 }
0x1516   :  { %vm2142_vm12 = vmor %vm2140_vm11, %vm2141_vm9 }
0x1517   :  { %v2137_v17 = vsub.f32 1.0, %v2136_v55 }
0x1519   :  { %v2138_v41 = vmul.f32 %v2466_v27, %v2137_v17 }
0x151b   :  { %v2139_v6 = vadd.f32 %v2466_v27, %v2138_v41 }
0x151d   :  { %v2143_v21 = vsel %vm2142_vm12, %v2466_v27, %v2139_v6 }
0x151e   :  { %v2148_v34 = vsel %vm2145_vm13, %v2147_v45, %v2143_v21 }
0x151f   :  { %v2151_v30 = vmul.f32 %v2148_v34, %v2106_v61  ;;  %v2183_v35 = vsub.f32 1.0, %v2148_v34  ;;  %v2182_v28 = vmul.f32 %v2148_v34, %v3473_v19 }
0x1521   :  { %2307 = vmatmul.msk.f32.vlgmr.msra.gmra.mxu1 %vm191_vm10, %v2151_v30 }
0x159e   :  { %v2172_v50 = vpop.f32.mrf.mxu1 }
0x159f   :  { %2176 = vrot.lane.b32.xlu2 %v2172_v50, %s2652_s7 }
0x15f9   :  { %v2177_v51 = vpop.permute.xlu2 %2176 }
0x15fa   :  { %v2179_v16 = vadd.f32 %v2177_v51, %v2101_v26 }
0x15fc   :  { %v2180_v32 = vadd.f32 %v2179_v16, %v2951_v52  ;;  %v2190_v52 = vld [vmem:[%s3526_s11] sm:$0xff] }
0x15fd   :  { %2218 = vmatpush.msra.mxu2 %v2190_v52 }
0x15fe   :  { %2467 = vtanh.f32 %v2180_v32 }
0x1604   :  { %v2468_v38 = vpop.eup %2467 }
0x1605   :  { %2185 = vrot.lane.b32.xlu0 %v2468_v38, %s2653_s5 }
0x1677   :  { %v2186_v25 = vpop.permute.xlu0 %2185 }
0x1678   :  { %v2188_v29 = vmul.f32 %v2186_v25, %v2183_v35 }
0x167a   :  { %v2189_v48 = vadd.f32 %v2188_v29, %v2182_v28 }
0x167c   :  { %2199 = vrot.lane.b32.xlu1 %v2189_v48, %s2653_s5 }
0x16ee   :  { %v2200_v49 = vpop.permute.xlu1 %2199 }
0x16ef   :  { %2308 = vmatmul.msk.f32.vlgmr.msra.gmra.mxu2 %vm191_vm10, %v2200_v49 }
0x1772   :  { %v2220_v1 = vpop.f32.mrf.mxu2 }
0x1773   :  { %v2221_v10 = vadd.f32 %v2324_v12, %v2220_v1 }
0x1775   :  { %2224 = vst.msk [vmem:[#allocation11] sm:$0x3] %vm2223_vm14, %v2221_v10 }
0x1776   :  { %2235 = dma.vmem_to_hbm [thread:$0]  %s2231_s29, 32, %s2233_s10, [#allocation4]  }
0x1777   :  { %2642 = dma.done.wait [#allocation4], 32  }
0x1778   :  { %2643 = vsyncadd [#allocation4], 4294967264 }
0x1779   :  { %2240 = vsyncpa [#allocation3], 1 }
0x177a   :  { %2241 = vsyncpa [#allocation6], 1 }
0x177b   :  { %2242 = vsyncpa [#allocation9], 1 }
0x177c   :  { %2243 = vsyncpa [#allocation4], 1 }

</bundles_post_ra>
